<compile_context>
chip_gen: v5e
topology: v5e:2x2
jax: 0.10.0
libtpu: 0.0.40
codegen_flags: <defaults>
</compile_context>

<pallas_src>
import math

import jax
import jax.numpy as jnp
from jax import lax
from jax.experimental import pallas as pl
from jax.experimental.pallas import tpu as pltpu


# ----------------------------------------------------------------------------
# Model config (small, consistent with the module's forward)
# ----------------------------------------------------------------------------
BATCH = 2
SEQ = 8
HIDDEN = 32          # "pretrained_dim"
NUM_HEADS = 2
HEAD_DIM = HIDDEN // NUM_HEADS
INTERMEDIATE = 64
NUM_LAYERS = 2
VOCAB = 64
TYPE_VOCAB = 2
MAX_POS = SEQ + 4
POLARITIES = 3       # "polarities_dim"
LANE_OUT = 128       # lane-dense padded classifier output width
PAD_IDX = 1          # RoBERTa padding_idx
LN_EPS = 1e-5
NEG_INF = -1e9       # additive mask value (f32 activations)


# ----------------------------------------------------------------------------
# Fused whole-model kernel (single invocation: whole batch in one step)
# ----------------------------------------------------------------------------
def _ln(x, g, b):
    """LayerNorm over the last dim on in-register values."""
    mu = jnp.mean(x, axis=-1, keepdims=True)
    var = jnp.mean((x - mu) * (x - mu), axis=-1, keepdims=True)
    return (x - mu) * jax.lax.rsqrt(var + LN_EPS) * g + b


def _xlmr_fused_kernel(
    # activations
    x_emb_ref, add_mask_ref,
    # embedding LayerNorm
    emb_ln_g_ref, emb_ln_b_ref,
    # per-layer stacked weights (leading dim = layer)
    wqkv_ref, bqkv_ref,
    wo_ref, bo_ref, attn_ln_g_ref, attn_ln_b_ref,
    wi_ref, bi_ref, wf_ref, bf_ref, ffn_ln_g_ref, ffn_ln_b_ref,
    # pooler + classifier (classifier padded to LANE_OUT lanes)
    pooler_w_ref, pooler_b_ref, final_w_ref, final_b_ref,
    # output (B, LANE_OUT)
    o_ref,
):
    H, Dh, S, B = HIDDEN, HEAD_DIM, SEQ, BATCH

    # --- embedding LayerNorm (dropout after embeddings: identity, eval) ------
    x = _ln(x_emb_ref[...], emb_ln_g_ref[...], emb_ln_b_ref[...])      # (B*S, H)
    add_mask = add_mask_ref[...]                                        # (B, S)

    # --- transformer layers (tiny static count -> unrolled) ------------------
    for l in range(NUM_LAYERS):
        # fused QKV projection on the whole batch; 1/sqrt(Dh) folded into Wq/bq
        qkv = (jnp.dot(x, wqkv_ref[l], preferred_element_type=jnp.float32)
               + bqkv_ref[l])                                           # (B*S, 3H)

        # multi-head attention: per-batch, per-head blocks stay in vregs
        ctx_rows = []
        for b in range(B):
            r0 = b * S
            qkv_b = qkv[r0:r0 + S, :]                                   # (S, 3H)
            mask_b = add_mask[b:b + 1, :]                               # (1, S)
            head_parts = []
            for h in range(NUM_HEADS):
                c0 = h * Dh
                q_h = qkv_b[:, c0:c0 + Dh]                              # (S, Dh)
                k_h = qkv_b[:, H + c0:H + c0 + Dh]
                v_h = qkv_b[:, 2 * H + c0:2 * H + c0 + Dh]
                # Q·Kᵀ without an explicit transpose of K
                s_h = lax.dot_general(
                    q_h, k_h,
                    dimension_numbers=(((1,), (1,)), ((), ())),
                    preferred_element_type=jnp.float32) + mask_b        # (S, S)
                s_h = s_h - jnp.max(s_h, axis=-1, keepdims=True)
                p_h = jnp.exp(s_h)
                p_h = p_h * pl.reciprocal(
                    jnp.sum(p_h, axis=-1, keepdims=True), approx=True)
                head_parts.append(
                    jnp.dot(p_h, v_h, preferred_element_type=jnp.float32))
            ctx_rows.append(jnp.concatenate(head_parts, axis=-1))       # (S, H)
        ctx = jnp.concatenate(ctx_rows, axis=0)                         # (B*S, H)

        # output projection + residual LayerNorm
        attn_out = (jnp.dot(ctx, wo_ref[l], preferred_element_type=jnp.float32)
                    + bo_ref[l])
        x = _ln(attn_out + x, attn_ln_g_ref[l], attn_ln_b_ref[l])

        # feed-forward + residual LayerNorm
        inter = (jnp.dot(x, wi_ref[l], preferred_element_type=jnp.float32)
                 + bi_ref[l])
        inter = jax.nn.gelu(inter, approximate=True)
        ffn_out = (jnp.dot(inter, wf_ref[l], preferred_element_type=jnp.float32)
                   + bf_ref[l])
        x = _ln(ffn_out + x, ffn_ln_g_ref[l], ffn_ln_b_ref[l])

    # --- pooler (tanh over [CLS] rows) + dropout(identity) + classifier ------
    cls = jnp.concatenate([x[b * S:b * S + 1, :] for b in range(B)], axis=0)  # (B, H)
    pooled = jnp.tanh(
        jnp.dot(cls, pooler_w_ref[...], preferred_element_type=jnp.float32)
        + pooler_b_ref[...])
    logits = (jnp.dot(pooled, final_w_ref[...], preferred_element_type=jnp.float32)
              + final_b_ref[...])                                       # (B, LANE_OUT)
    o_ref[...] = logits.astype(o_ref.dtype)                             # lane-dense store


# ----------------------------------------------------------------------------
# Deterministic synthetic parameters + packing (QKV fusion, scale folding)
# ----------------------------------------------------------------------------
def init_params(key):
    def nrm(key, shape, scale=0.02):
        return scale * jax.random.normal(key, shape, dtype=jnp.float32)

    keys = iter(jax.random.split(key, 64))
    p = {
        "word_emb": nrm(next(keys), (VOCAB, HIDDEN)),
        "pos_emb": nrm(next(keys), (MAX_POS, HIDDEN)),
        "type_emb": nrm(next(keys), (TYPE_VOCAB, HIDDEN)),
        "emb_ln_g": jnp.ones((HIDDEN,), jnp.float32),
        "emb_ln_b": jnp.zeros((HIDDEN,), jnp.float32),
        "layers": [],
        "pooler_w": nrm(next(keys), (HIDDEN, HIDDEN)),
        "pooler_b": jnp.zeros((HIDDEN,), jnp.float32),
        "final_w": nrm(next(keys), (HIDDEN, POLARITIES)),
        "final_b": jnp.zeros((POLARITIES,), jnp.float32),
    }
    for _ in range(NUM_LAYERS):
        p["layers"].append({
            "wq": nrm(next(keys), (HIDDEN, HIDDEN)),
            "bq": jnp.zeros((HIDDEN,), jnp.float32),
            "wk": nrm(next(keys), (HIDDEN, HIDDEN)),
            "bk": jnp.zeros((HIDDEN,), jnp.float32),
            "wv": nrm(next(keys), (HIDDEN, HIDDEN)),
            "bv": jnp.zeros((HIDDEN,), jnp.float32),
            "wo": nrm(next(keys), (HIDDEN, HIDDEN)),
            "bo": jnp.zeros((HIDDEN,), jnp.float32),
            "attn_ln_g": jnp.ones((HIDDEN,), jnp.float32),
            "attn_ln_b": jnp.zeros((HIDDEN,), jnp.float32),
            "wi": nrm(next(keys), (HIDDEN, INTERMEDIATE)),
            "bi": jnp.zeros((INTERMEDIATE,), jnp.float32),
            "wf": nrm(next(keys), (INTERMEDIATE, HIDDEN)),
            "bf": jnp.zeros((HIDDEN,), jnp.float32),
            "ffn_ln_g": jnp.ones((HIDDEN,), jnp.float32),
            "ffn_ln_b": jnp.zeros((HIDDEN,), jnp.float32),
        })
    return p


def pack_params(p):
    """Stack per-layer weights on a leading layer axis, fuse QKV into one
    (H, 3H) matrix, fold the 1/sqrt(head_dim) attention scale into Wq/bq,
    reshape biases / LN params to (1, N) for broadcasting, and zero-pad the
    classifier to LANE_OUT output lanes for a lane-dense final store."""
    scale = 1.0 / math.sqrt(HEAD_DIM)
    L = p["layers"]

    def stack(fn):
        return jnp.stack([fn(l) for l in L], axis=0)

    final_w_pad = jnp.zeros((HIDDEN, LANE_OUT), jnp.float32)
    final_w_pad = final_w_pad.at[:, :POLARITIES].set(p["final_w"])
    final_b_pad = jnp.zeros((1, LANE_OUT), jnp.float32)
    final_b_pad = final_b_pad.at[0, :POLARITIES].set(p["final_b"])

    return {
        "word_emb": p["word_emb"],
        "pos_emb": p["pos_emb"],
        "type_emb": p["type_emb"],
        "emb_ln_g": p["emb_ln_g"].reshape(1, HIDDEN),
        "emb_ln_b": p["emb_ln_b"].reshape(1, HIDDEN),
        "wqkv": stack(lambda l: jnp.concatenate(
            [l["wq"] * scale, l["wk"], l["wv"]], axis=1)),            # (L, H, 3H)
        "bqkv": stack(lambda l: jnp.concatenate(
            [l["bq"] * scale, l["bk"], l["bv"]]).reshape(1, 3 * HIDDEN)),
        "wo": stack(lambda l: l["wo"]),
        "bo": stack(lambda l: l["bo"].reshape(1, HIDDEN)),
        "attn_ln_g": stack(lambda l: l["attn_ln_g"].reshape(1, HIDDEN)),
        "attn_ln_b": stack(lambda l: l["attn_ln_b"].reshape(1, HIDDEN)),
        "wi": stack(lambda l: l["wi"]),
        "bi": stack(lambda l: l["bi"].reshape(1, INTERMEDIATE)),
        "wf": stack(lambda l: l["wf"]),
        "bf": stack(lambda l: l["bf"].reshape(1, HIDDEN)),
        "ffn_ln_g": stack(lambda l: l["ffn_ln_g"].reshape(1, HIDDEN)),
        "ffn_ln_b": stack(lambda l: l["ffn_ln_b"].reshape(1, HIDDEN)),
        "pooler_w": p["pooler_w"],
        "pooler_b": p["pooler_b"].reshape(1, HIDDEN),
        "final_w": final_w_pad,                                       # (H, 128)
        "final_b": final_b_pad,                                       # (1, 128)
    }


_WEIGHT_NAMES = (
    "emb_ln_g", "emb_ln_b",
    "wqkv", "bqkv",
    "wo", "bo", "attn_ln_g", "attn_ln_b",
    "wi", "bi", "wf", "bf", "ffn_ln_g", "ffn_ln_b",
    "pooler_w", "pooler_b", "final_w", "final_b",
)


# ----------------------------------------------------------------------------
# Forward pass: XLA embedding gathers -> single fused Pallas kernel
# ----------------------------------------------------------------------------
@jax.jit
def xlmr_classifier_forward(packed, input_ids, token_type_ids, attention_mask):
    B, S = input_ids.shape
    mask_f = attention_mask.astype(jnp.float32)

    # RoBERTa-style position ids (cumsum of mask, offset by padding_idx)
    pos_ids = jnp.cumsum(attention_mask, axis=1) * attention_mask + PAD_IDX
    x_emb = (jnp.take(packed["word_emb"], input_ids, axis=0)
             + jnp.take(packed["pos_emb"], pos_ids, axis=0)
             + jnp.take(packed["type_emb"], token_type_ids, axis=0)
             ).reshape(B * S, HIDDEN)

    # tiny (B, S) additive mask row; (S, S) broadcast happens in-kernel
    add_mask = (1.0 - mask_f) * NEG_INF                                # (B, S)

    weights = [packed[n] for n in _WEIGHT_NAMES]

    def full(arr):
        nd = arr.ndim
        return pl.BlockSpec(arr.shape, lambda i, nd=nd: (0,) * nd)

    logits_pad = pl.pallas_call(
        _xlmr_fused_kernel,
        out_shape=jax.ShapeDtypeStruct((B, LANE_OUT), jnp.float32),
        grid=(1,),                                   # whole batch in one step
        in_specs=[full(x_emb), full(add_mask)] + [full(w) for w in weights],
        out_specs=pl.BlockSpec((B, LANE_OUT), lambda i: (0, 0)),
        compiler_params=pltpu.CompilerParams(
            dimension_semantics=("arbitrary",)),
    )(x_emb, add_mask, *weights)

    return logits_pad[:, :POLARITIES]


# ----------------------------------------------------------------------------
# Pure-JAX reference (same math, XLA only) for validation
# ----------------------------------------------------------------------------
def reference_forward(packed, input_ids, token_type_ids, attention_mask):
    B, S = input_ids.shape
    mask_f = attention_mask.astype(jnp.float32)
    pos_ids = jnp.cumsum(attention_mask, axis=1) * attention_mask + PAD_IDX
    x = (jnp.take(packed["word_emb"], input_ids, axis=0)
         + jnp.take(packed["pos_emb"], pos_ids, axis=0)
         + jnp.take(packed["type_emb"], token_type_ids, axis=0))        # (B,S,H)

    def ln(v, g, b):
        mu = jnp.mean(v, -1, keepdims=True)
        var = jnp.mean((v - mu) ** 2, -1, keepdims=True)
        return (v - mu) * jax.lax.rsqrt(var + LN_EPS) * g + b

    x = ln(x, packed["emb_ln_g"][0], packed["emb_ln_b"][0])
    add_mask = ((1.0 - mask_f) * NEG_INF)[:, None, None, :]             # (B,1,1,S)

    def heads(t):
        return t.reshape(B, S, NUM_HEADS, HEAD_DIM).transpose(0, 2, 1, 3)

    for l in range(NUM_LAYERS):
        qkv = x @ packed["wqkv"][l] + packed["bqkv"][l]
        q, k, v = (heads(t) for t in jnp.split(qkv, 3, axis=-1))
        s = jnp.einsum("bhqd,bhkd->bhqk", q, k) + add_mask
        p = jax.nn.softmax(s, axis=-1)
        ctx = jnp.einsum("bhqk,bhkd->bhqd", p, v).transpose(0, 2, 1, 3)
        ctx = ctx.reshape(B, S, HIDDEN)
        x = ln(ctx @ packed["wo"][l] + packed["bo"][l] + x,
               packed["attn_ln_g"][l], packed["attn_ln_b"][l])
        inter = jax.nn.gelu(x @ packed["wi"][l] + packed["bi"][l],
                            approximate=True)
        x = ln(inter @ packed["wf"][l] + packed["bf"][l] + x,
               packed["ffn_ln_g"][l], packed["ffn_ln_b"][l])

    pooled = jnp.tanh(x[:, 0, :] @ packed["pooler_w"] + packed["pooler_b"][0])
    logits = pooled @ packed["final_w"] + packed["final_b"][0]          # (B, 128)
    return logits[:, :POLARITIES]


# ----------------------------------------------------------------------------
# Driver
# ----------------------------------------------------------------------------
if __name__ == "__main__":
    key = jax.random.PRNGKey(0)
    k_param, k_ids = jax.random.split(key)

    packed = pack_params(init_params(k_param))

    input_ids = jax.random.randint(k_ids, (BATCH, SEQ), 2, VOCAB, dtype=jnp.int32)
    token_type_ids = jnp.zeros((BATCH, SEQ), dtype=jnp.int32)
    attention_mask = jnp.ones((BATCH, SEQ), dtype=jnp.int32)
    # last two positions of batch 1 are padding, to exercise masking
    attention_mask = attention_mask.at[1, -2:].set(0)
    input_ids = input_ids.at[1, -2:].set(PAD_IDX)

    out = xlmr_classifier_forward(packed, input_ids, token_type_ids, attention_mask)
    out = jax.block_until_ready(out)
    assert out.shape == (BATCH, POLARITIES), out.shape
    assert out.dtype == jnp.float32
    assert bool(jnp.isfinite(out).all())

    ref = reference_forward(packed, input_ids, token_type_ids, attention_mask)
    max_err = float(jnp.max(jnp.abs(out - ref)))
    assert max_err < 2e-2, f"kernel/reference mismatch: max abs err {max_err}"

    print("KERNEL_OK")
</pallas_src>

<mosaic_0001>
module attributes {stable_mosaic.version = 11 : i64} {
  func.func @_xlmr_fused_kernel(%arg0: i32, %arg1: memref<16x32xf32, #tpu.memory_space<vmem>>, %arg2: memref<2x8xf32, #tpu.memory_space<vmem>>, %arg3: memref<1x32xf32, #tpu.memory_space<vmem>>, %arg4: memref<1x32xf32, #tpu.memory_space<vmem>>, %arg5: memref<2x32x96xf32, #tpu.memory_space<vmem>>, %arg6: memref<2x1x96xf32, #tpu.memory_space<vmem>>, %arg7: memref<2x32x32xf32, #tpu.memory_space<vmem>>, %arg8: memref<2x1x32xf32, #tpu.memory_space<vmem>>, %arg9: memref<2x1x32xf32, #tpu.memory_space<vmem>>, %arg10: memref<2x1x32xf32, #tpu.memory_space<vmem>>, %arg11: memref<2x32x64xf32, #tpu.memory_space<vmem>>, %arg12: memref<2x1x64xf32, #tpu.memory_space<vmem>>, %arg13: memref<2x64x32xf32, #tpu.memory_space<vmem>>, %arg14: memref<2x1x32xf32, #tpu.memory_space<vmem>>, %arg15: memref<2x1x32xf32, #tpu.memory_space<vmem>>, %arg16: memref<2x1x32xf32, #tpu.memory_space<vmem>>, %arg17: memref<32x32xf32, #tpu.memory_space<vmem>>, %arg18: memref<1x32xf32, #tpu.memory_space<vmem>>, %arg19: memref<32x128xf32, #tpu.memory_space<vmem>>, %arg20: memref<1x128xf32, #tpu.memory_space<vmem>>, %arg21: memref<2x128xf32, #tpu.memory_space<vmem>>) attributes {dimension_semantics = [#tpu.dimension_semantics<arbitrary>], iteration_bounds = array<i64: 1>, scalar_prefetch = 0 : i64, scratch_operands = 0 : i64, tpu.core_type = #tpu.core_type<tc>, window_params = [{pipeline_mode = #tpu.pipeline_mode<synchronous>, transform_indices = @transform_0, window_bounds = array<i64: 16, 32>}, {pipeline_mode = #tpu.pipeline_mode<synchronous>, transform_indices = @transform_1, window_bounds = array<i64: 2, 8>}, {pipeline_mode = #tpu.pipeline_mode<synchronous>, transform_indices = @transform_2, window_bounds = array<i64: 1, 32>}, {pipeline_mode = #tpu.pipeline_mode<synchronous>, transform_indices = @transform_3, window_bounds = array<i64: 1, 32>}, {pipeline_mode = #tpu.pipeline_mode<synchronous>, transform_indices = @transform_4, window_bounds = array<i64: 2, 32, 96>}, {pipeline_mode = #tpu.pipeline_mode<synchronous>, transform_indices = @transform_5, window_bounds = array<i64: 2, 1, 96>}, {pipeline_mode = #tpu.pipeline_mode<synchronous>, transform_indices = @transform_6, window_bounds = array<i64: 2, 32, 32>}, {pipeline_mode = #tpu.pipeline_mode<synchronous>, transform_indices = @transform_7, window_bounds = array<i64: 2, 1, 32>}, {pipeline_mode = #tpu.pipeline_mode<synchronous>, transform_indices = @transform_8, window_bounds = array<i64: 2, 1, 32>}, {pipeline_mode = #tpu.pipeline_mode<synchronous>, transform_indices = @transform_9, window_bounds = array<i64: 2, 1, 32>}, {pipeline_mode = #tpu.pipeline_mode<synchronous>, transform_indices = @transform_10, window_bounds = array<i64: 2, 32, 64>}, {pipeline_mode = #tpu.pipeline_mode<synchronous>, transform_indices = @transform_11, window_bounds = array<i64: 2, 1, 64>}, {pipeline_mode = #tpu.pipeline_mode<synchronous>, transform_indices = @transform_12, window_bounds = array<i64: 2, 64, 32>}, {pipeline_mode = #tpu.pipeline_mode<synchronous>, transform_indices = @transform_13, window_bounds = array<i64: 2, 1, 32>}, {pipeline_mode = #tpu.pipeline_mode<synchronous>, transform_indices = @transform_14, window_bounds = array<i64: 2, 1, 32>}, {pipeline_mode = #tpu.pipeline_mode<synchronous>, transform_indices = @transform_15, window_bounds = array<i64: 2, 1, 32>}, {pipeline_mode = #tpu.pipeline_mode<synchronous>, transform_indices = @transform_16, window_bounds = array<i64: 32, 32>}, {pipeline_mode = #tpu.pipeline_mode<synchronous>, transform_indices = @transform_17, window_bounds = array<i64: 1, 32>}, {pipeline_mode = #tpu.pipeline_mode<synchronous>, transform_indices = @transform_18, window_bounds = array<i64: 32, 128>}, {pipeline_mode = #tpu.pipeline_mode<synchronous>, transform_indices = @transform_19, window_bounds = array<i64: 1, 128>}, {pipeline_mode = #tpu.pipeline_mode<synchronous>, transform_indices = @transform_20, window_bounds = array<i64: 2, 128>}]} {
    %c0 = arith.constant 0 : index
    %c0_0 = arith.constant 0 : index
    %0 = vector.load %arg1[%c0, %c0_0] : memref<16x32xf32, #tpu.memory_space<vmem>>, vector<16x32xf32>
    %c0_1 = arith.constant 0 : index
    %c0_2 = arith.constant 0 : index
    %1 = vector.load %arg3[%c0_1, %c0_2] : memref<1x32xf32, #tpu.memory_space<vmem>>, vector<1x32xf32>
    %c0_3 = arith.constant 0 : index
    %c0_4 = arith.constant 0 : index
    %2 = vector.load %arg4[%c0_3, %c0_4] : memref<1x32xf32, #tpu.memory_space<vmem>>, vector<1x32xf32>
    %cst = arith.constant dense<0.000000e+00> : vector<16xf32>
    %3 = vector.multi_reduction <add>, %0, %cst [1] : vector<16x32xf32> to vector<16xf32>
    %4 = vector.shape_cast %3 : vector<16xf32> to vector<16x1xf32>
    %cst_5 = arith.constant 3.200000e+01 : f32
    %5 = vector.broadcast %cst_5 : f32 to vector<16x1xf32>
    %6 = arith.divf %4, %5 : vector<16x1xf32>
    %7 = vector.broadcast %6 : vector<16x1xf32> to vector<16x32xf32>
    %8 = arith.subf %0, %7 : vector<16x32xf32>
    %9 = vector.broadcast %6 : vector<16x1xf32> to vector<16x32xf32>
    %10 = arith.subf %0, %9 : vector<16x32xf32>
    %11 = arith.mulf %8, %10 : vector<16x32xf32>
    %cst_6 = arith.constant dense<0.000000e+00> : vector<16xf32>
    %12 = vector.multi_reduction <add>, %11, %cst_6 [1] : vector<16x32xf32> to vector<16xf32>
    %13 = vector.shape_cast %12 : vector<16xf32> to vector<16x1xf32>
    %cst_7 = arith.constant 3.200000e+01 : f32
    %14 = vector.broadcast %cst_7 : f32 to vector<16x1xf32>
    %15 = arith.divf %13, %14 : vector<16x1xf32>
    %16 = vector.broadcast %6 : vector<16x1xf32> to vector<16x32xf32>
    %17 = arith.subf %0, %16 : vector<16x32xf32>
    %cst_8 = arith.constant 9.99999974E-6 : f32
    %18 = vector.broadcast %cst_8 : f32 to vector<16x1xf32>
    %19 = arith.addf %15, %18 : vector<16x1xf32>
    %20 = math.rsqrt %19 : vector<16x1xf32>
    %21 = vector.broadcast %20 : vector<16x1xf32> to vector<16x32xf32>
    %22 = arith.mulf %17, %21 : vector<16x32xf32>
    %23 = vector.broadcast %1 : vector<1x32xf32> to vector<16x32xf32>
    %24 = arith.mulf %22, %23 : vector<16x32xf32>
    %25 = vector.broadcast %2 : vector<1x32xf32> to vector<16x32xf32>
    %26 = arith.addf %24, %25 : vector<16x32xf32>
    %c0_9 = arith.constant 0 : index
    %c0_10 = arith.constant 0 : index
    %27 = vector.load %arg2[%c0_9, %c0_10] : memref<2x8xf32, #tpu.memory_space<vmem>>, vector<2x8xf32>
    %c0_11 = arith.constant 0 : index
    %c0_12 = arith.constant 0 : index
    %c0_13 = arith.constant 0 : index
    %28 = vector.load %arg5[%c0_11, %c0_12, %c0_13] : memref<2x32x96xf32, #tpu.memory_space<vmem>>, vector<1x32x96xf32>
    %29 = vector.shape_cast %28 : vector<1x32x96xf32> to vector<32x96xf32>
    %cst_14 = arith.constant dense<0.000000e+00> : vector<16x96xf32>
    %30 = tpu.matmul %26, %29, %cst_14 {dimension_numbers = #tpu.dot_dimension_numbers<[1], [0], [0], [1], [0, 0, 1, 1], [], []>} : vector<16x32xf32>, vector<32x96xf32>, vector<16x96xf32> -> vector<16x96xf32>
    %c0_15 = arith.constant 0 : index
    %c0_16 = arith.constant 0 : index
    %c0_17 = arith.constant 0 : index
    %31 = vector.load %arg6[%c0_15, %c0_16, %c0_17] : memref<2x1x96xf32, #tpu.memory_space<vmem>>, vector<1x1x96xf32>
    %32 = vector.shape_cast %31 : vector<1x1x96xf32> to vector<1x96xf32>
    %33 = vector.broadcast %32 : vector<1x96xf32> to vector<16x96xf32>
    %34 = arith.addf %30, %33 : vector<16x96xf32>
    %35 = vector.extract_strided_slice %34 {offsets = [0, 0], sizes = [8, 96], strides = [1, 1]} : vector<16x96xf32> to vector<8x96xf32>
    %36 = vector.extract_strided_slice %27 {offsets = [0, 0], sizes = [1, 8], strides = [1, 1]} : vector<2x8xf32> to vector<1x8xf32>
    %37 = vector.extract_strided_slice %35 {offsets = [0, 0], sizes = [8, 16], strides = [1, 1]} : vector<8x96xf32> to vector<8x16xf32>
    %38 = vector.extract_strided_slice %35 {offsets = [0, 32], sizes = [8, 16], strides = [1, 1]} : vector<8x96xf32> to vector<8x16xf32>
    %39 = vector.extract_strided_slice %35 {offsets = [0, 64], sizes = [8, 16], strides = [1, 1]} : vector<8x96xf32> to vector<8x16xf32>
    %cst_18 = arith.constant dense<0.000000e+00> : vector<8x8xf32>
    %40 = tpu.matmul %37, %38, %cst_18 {dimension_numbers = #tpu.dot_dimension_numbers<[1], [1], [0], [0], [0, 0, 1, 0], [], []>} : vector<8x16xf32>, vector<8x16xf32>, vector<8x8xf32> -> vector<8x8xf32>
    %41 = vector.broadcast %36 : vector<1x8xf32> to vector<8x8xf32>
    %42 = arith.addf %40, %41 : vector<8x8xf32>
    %cst_19 = arith.constant dense<0xFF800000> : vector<8xf32>
    %43 = vector.multi_reduction <maximumf>, %42, %cst_19 [1] : vector<8x8xf32> to vector<8xf32>
    %44 = vector.shape_cast %43 : vector<8xf32> to vector<8x1xf32>
    %45 = vector.broadcast %44 : vector<8x1xf32> to vector<8x8xf32>
    %46 = arith.subf %42, %45 : vector<8x8xf32>
    %47 = math.exp %46 : vector<8x8xf32>
    %cst_20 = arith.constant dense<0.000000e+00> : vector<8xf32>
    %48 = vector.multi_reduction <add>, %47, %cst_20 [1] : vector<8x8xf32> to vector<8xf32>
    %49 = vector.shape_cast %48 : vector<8xf32> to vector<8x1xf32>
    %50 = tpu.reciprocal %49 {approx = true} : vector<8x1xf32> -> vector<8x1xf32>
    %51 = vector.broadcast %50 : vector<8x1xf32> to vector<8x8xf32>
    %52 = arith.mulf %47, %51 : vector<8x8xf32>
    %cst_21 = arith.constant dense<0.000000e+00> : vector<8x16xf32>
    %53 = tpu.matmul %52, %39, %cst_21 {dimension_numbers = #tpu.dot_dimension_numbers<[1], [0], [0], [1], [0, 0, 1, 1], [], []>} : vector<8x8xf32>, vector<8x16xf32>, vector<8x16xf32> -> vector<8x16xf32>
    %54 = vector.extract_strided_slice %35 {offsets = [0, 16], sizes = [8, 16], strides = [1, 1]} : vector<8x96xf32> to vector<8x16xf32>
    %55 = vector.extract_strided_slice %35 {offsets = [0, 48], sizes = [8, 16], strides = [1, 1]} : vector<8x96xf32> to vector<8x16xf32>
    %56 = vector.extract_strided_slice %35 {offsets = [0, 80], sizes = [8, 16], strides = [1, 1]} : vector<8x96xf32> to vector<8x16xf32>
    %cst_22 = arith.constant dense<0.000000e+00> : vector<8x8xf32>
    %57 = tpu.matmul %54, %55, %cst_22 {dimension_numbers = #tpu.dot_dimension_numbers<[1], [1], [0], [0], [0, 0, 1, 0], [], []>} : vector<8x16xf32>, vector<8x16xf32>, vector<8x8xf32> -> vector<8x8xf32>
    %58 = vector.broadcast %36 : vector<1x8xf32> to vector<8x8xf32>
    %59 = arith.addf %57, %58 : vector<8x8xf32>
    %cst_23 = arith.constant dense<0xFF800000> : vector<8xf32>
    %60 = vector.multi_reduction <maximumf>, %59, %cst_23 [1] : vector<8x8xf32> to vector<8xf32>
    %61 = vector.shape_cast %60 : vector<8xf32> to vector<8x1xf32>
    %62 = vector.broadcast %61 : vector<8x1xf32> to vector<8x8xf32>
    %63 = arith.subf %59, %62 : vector<8x8xf32>
    %64 = math.exp %63 : vector<8x8xf32>
    %cst_24 = arith.constant dense<0.000000e+00> : vector<8xf32>
    %65 = vector.multi_reduction <add>, %64, %cst_24 [1] : vector<8x8xf32> to vector<8xf32>
    %66 = vector.shape_cast %65 : vector<8xf32> to vector<8x1xf32>
    %67 = tpu.reciprocal %66 {approx = true} : vector<8x1xf32> -> vector<8x1xf32>
    %68 = vector.broadcast %67 : vector<8x1xf32> to vector<8x8xf32>
    %69 = arith.mulf %64, %68 : vector<8x8xf32>
    %cst_25 = arith.constant dense<0.000000e+00> : vector<8x16xf32>
    %70 = tpu.matmul %69, %56, %cst_25 {dimension_numbers = #tpu.dot_dimension_numbers<[1], [0], [0], [1], [0, 0, 1, 1], [], []>} : vector<8x8xf32>, vector<8x16xf32>, vector<8x16xf32> -> vector<8x16xf32>
    %71 = tpu.concatenate %53, %70 in 1 : vector<8x16xf32>, vector<8x16xf32> -> vector<8x32xf32>
    %72 = vector.extract_strided_slice %34 {offsets = [8, 0], sizes = [8, 96], strides = [1, 1]} : vector<16x96xf32> to vector<8x96xf32>
    %73 = vector.extract_strided_slice %27 {offsets = [1, 0], sizes = [1, 8], strides = [1, 1]} : vector<2x8xf32> to vector<1x8xf32>
    %74 = vector.extract_strided_slice %72 {offsets = [0, 0], sizes = [8, 16], strides = [1, 1]} : vector<8x96xf32> to vector<8x16xf32>
    %75 = vector.extract_strided_slice %72 {offsets = [0, 32], sizes = [8, 16], strides = [1, 1]} : vector<8x96xf32> to vector<8x16xf32>
    %76 = vector.extract_strided_slice %72 {offsets = [0, 64], sizes = [8, 16], strides = [1, 1]} : vector<8x96xf32> to vector<8x16xf32>
    %cst_26 = arith.constant dense<0.000000e+00> : vector<8x8xf32>
    %77 = tpu.matmul %74, %75, %cst_26 {dimension_numbers = #tpu.dot_dimension_numbers<[1], [1], [0], [0], [0, 0, 1, 0], [], []>} : vector<8x16xf32>, vector<8x16xf32>, vector<8x8xf32> -> vector<8x8xf32>
    %78 = vector.broadcast %73 : vector<1x8xf32> to vector<8x8xf32>
    %79 = arith.addf %77, %78 : vector<8x8xf32>
    %cst_27 = arith.constant dense<0xFF800000> : vector<8xf32>
    %80 = vector.multi_reduction <maximumf>, %79, %cst_27 [1] : vector<8x8xf32> to vector<8xf32>
    %81 = vector.shape_cast %80 : vector<8xf32> to vector<8x1xf32>
    %82 = vector.broadcast %81 : vector<8x1xf32> to vector<8x8xf32>
    %83 = arith.subf %79, %82 : vector<8x8xf32>
    %84 = math.exp %83 : vector<8x8xf32>
    %cst_28 = arith.constant dense<0.000000e+00> : vector<8xf32>
    %85 = vector.multi_reduction <add>, %84, %cst_28 [1] : vector<8x8xf32> to vector<8xf32>
    %86 = vector.shape_cast %85 : vector<8xf32> to vector<8x1xf32>
    %87 = tpu.reciprocal %86 {approx = true} : vector<8x1xf32> -> vector<8x1xf32>
    %88 = vector.broadcast %87 : vector<8x1xf32> to vector<8x8xf32>
    %89 = arith.mulf %84, %88 : vector<8x8xf32>
    %cst_29 = arith.constant dense<0.000000e+00> : vector<8x16xf32>
    %90 = tpu.matmul %89, %76, %cst_29 {dimension_numbers = #tpu.dot_dimension_numbers<[1], [0], [0], [1], [0, 0, 1, 1], [], []>} : vector<8x8xf32>, vector<8x16xf32>, vector<8x16xf32> -> vector<8x16xf32>
    %91 = vector.extract_strided_slice %72 {offsets = [0, 16], sizes = [8, 16], strides = [1, 1]} : vector<8x96xf32> to vector<8x16xf32>
    %92 = vector.extract_strided_slice %72 {offsets = [0, 48], sizes = [8, 16], strides = [1, 1]} : vector<8x96xf32> to vector<8x16xf32>
    %93 = vector.extract_strided_slice %72 {offsets = [0, 80], sizes = [8, 16], strides = [1, 1]} : vector<8x96xf32> to vector<8x16xf32>
    %cst_30 = arith.constant dense<0.000000e+00> : vector<8x8xf32>
    %94 = tpu.matmul %91, %92, %cst_30 {dimension_numbers = #tpu.dot_dimension_numbers<[1], [1], [0], [0], [0, 0, 1, 0], [], []>} : vector<8x16xf32>, vector<8x16xf32>, vector<8x8xf32> -> vector<8x8xf32>
    %95 = vector.broadcast %73 : vector<1x8xf32> to vector<8x8xf32>
    %96 = arith.addf %94, %95 : vector<8x8xf32>
    %cst_31 = arith.constant dense<0xFF800000> : vector<8xf32>
    %97 = vector.multi_reduction <maximumf>, %96, %cst_31 [1] : vector<8x8xf32> to vector<8xf32>
    %98 = vector.shape_cast %97 : vector<8xf32> to vector<8x1xf32>
    %99 = vector.broadcast %98 : vector<8x1xf32> to vector<8x8xf32>
    %100 = arith.subf %96, %99 : vector<8x8xf32>
    %101 = math.exp %100 : vector<8x8xf32>
    %cst_32 = arith.constant dense<0.000000e+00> : vector<8xf32>
    %102 = vector.multi_reduction <add>, %101, %cst_32 [1] : vector<8x8xf32> to vector<8xf32>
    %103 = vector.shape_cast %102 : vector<8xf32> to vector<8x1xf32>
    %104 = tpu.reciprocal %103 {approx = true} : vector<8x1xf32> -> vector<8x1xf32>
    %105 = vector.broadcast %104 : vector<8x1xf32> to vector<8x8xf32>
    %106 = arith.mulf %101, %105 : vector<8x8xf32>
    %cst_33 = arith.constant dense<0.000000e+00> : vector<8x16xf32>
    %107 = tpu.matmul %106, %93, %cst_33 {dimension_numbers = #tpu.dot_dimension_numbers<[1], [0], [0], [1], [0, 0, 1, 1], [], []>} : vector<8x8xf32>, vector<8x16xf32>, vector<8x16xf32> -> vector<8x16xf32>
    %108 = tpu.concatenate %90, %107 in 1 : vector<8x16xf32>, vector<8x16xf32> -> vector<8x32xf32>
    %109 = tpu.concatenate %71, %108 in 0 : vector<8x32xf32>, vector<8x32xf32> -> vector<16x32xf32>
    %c0_34 = arith.constant 0 : index
    %c0_35 = arith.constant 0 : index
    %c0_36 = arith.constant 0 : index
    %110 = vector.load %arg7[%c0_34, %c0_35, %c0_36] : memref<2x32x32xf32, #tpu.memory_space<vmem>>, vector<1x32x32xf32>
    %111 = vector.shape_cast %110 : vector<1x32x32xf32> to vector<32x32xf32>
    %cst_37 = arith.constant dense<0.000000e+00> : vector<16x32xf32>
    %112 = tpu.matmul %109, %111, %cst_37 {dimension_numbers = #tpu.dot_dimension_numbers<[1], [0], [0], [1], [0, 0, 1, 1], [], []>} : vector<16x32xf32>, vector<32x32xf32>, vector<16x32xf32> -> vector<16x32xf32>
    %c0_38 = arith.constant 0 : index
    %c0_39 = arith.constant 0 : index
    %c0_40 = arith.constant 0 : index
    %113 = vector.load %arg8[%c0_38, %c0_39, %c0_40] : memref<2x1x32xf32, #tpu.memory_space<vmem>>, vector<1x1x32xf32>
    %114 = vector.shape_cast %113 : vector<1x1x32xf32> to vector<1x32xf32>
    %115 = vector.broadcast %114 : vector<1x32xf32> to vector<16x32xf32>
    %116 = arith.addf %112, %115 : vector<16x32xf32>
    %117 = arith.addf %116, %26 : vector<16x32xf32>
    %c0_41 = arith.constant 0 : index
    %c0_42 = arith.constant 0 : index
    %c0_43 = arith.constant 0 : index
    %118 = vector.load %arg9[%c0_41, %c0_42, %c0_43] : memref<2x1x32xf32, #tpu.memory_space<vmem>>, vector<1x1x32xf32>
    %119 = vector.shape_cast %118 : vector<1x1x32xf32> to vector<1x32xf32>
    %c0_44 = arith.constant 0 : index
    %c0_45 = arith.constant 0 : index
    %c0_46 = arith.constant 0 : index
    %120 = vector.load %arg10[%c0_44, %c0_45, %c0_46] : memref<2x1x32xf32, #tpu.memory_space<vmem>>, vector<1x1x32xf32>
    %121 = vector.shape_cast %120 : vector<1x1x32xf32> to vector<1x32xf32>
    %cst_47 = arith.constant dense<0.000000e+00> : vector<16xf32>
    %122 = vector.multi_reduction <add>, %117, %cst_47 [1] : vector<16x32xf32> to vector<16xf32>
    %123 = vector.shape_cast %122 : vector<16xf32> to vector<16x1xf32>
    %cst_48 = arith.constant 3.200000e+01 : f32
    %124 = vector.broadcast %cst_48 : f32 to vector<16x1xf32>
    %125 = arith.divf %123, %124 : vector<16x1xf32>
    %126 = vector.broadcast %125 : vector<16x1xf32> to vector<16x32xf32>
    %127 = arith.subf %117, %126 : vector<16x32xf32>
    %128 = vector.broadcast %125 : vector<16x1xf32> to vector<16x32xf32>
    %129 = arith.subf %117, %128 : vector<16x32xf32>
    %130 = arith.mulf %127, %129 : vector<16x32xf32>
    %cst_49 = arith.constant dense<0.000000e+00> : vector<16xf32>
    %131 = vector.multi_reduction <add>, %130, %cst_49 [1] : vector<16x32xf32> to vector<16xf32>
    %132 = vector.shape_cast %131 : vector<16xf32> to vector<16x1xf32>
    %cst_50 = arith.constant 3.200000e+01 : f32
    %133 = vector.broadcast %cst_50 : f32 to vector<16x1xf32>
    %134 = arith.divf %132, %133 : vector<16x1xf32>
    %135 = vector.broadcast %125 : vector<16x1xf32> to vector<16x32xf32>
    %136 = arith.subf %117, %135 : vector<16x32xf32>
    %cst_51 = arith.constant 9.99999974E-6 : f32
    %137 = vector.broadcast %cst_51 : f32 to vector<16x1xf32>
    %138 = arith.addf %134, %137 : vector<16x1xf32>
    %139 = math.rsqrt %138 : vector<16x1xf32>
    %140 = vector.broadcast %139 : vector<16x1xf32> to vector<16x32xf32>
    %141 = arith.mulf %136, %140 : vector<16x32xf32>
    %142 = vector.broadcast %119 : vector<1x32xf32> to vector<16x32xf32>
    %143 = arith.mulf %141, %142 : vector<16x32xf32>
    %144 = vector.broadcast %121 : vector<1x32xf32> to vector<16x32xf32>
    %145 = arith.addf %143, %144 : vector<16x32xf32>
    %c0_52 = arith.constant 0 : index
    %c0_53 = arith.constant 0 : index
    %c0_54 = arith.constant 0 : index
    %146 = vector.load %arg11[%c0_52, %c0_53, %c0_54] : memref<2x32x64xf32, #tpu.memory_space<vmem>>, vector<1x32x64xf32>
    %147 = vector.shape_cast %146 : vector<1x32x64xf32> to vector<32x64xf32>
    %cst_55 = arith.constant dense<0.000000e+00> : vector<16x64xf32>
    %148 = tpu.matmul %145, %147, %cst_55 {dimension_numbers = #tpu.dot_dimension_numbers<[1], [0], [0], [1], [0, 0, 1, 1], [], []>} : vector<16x32xf32>, vector<32x64xf32>, vector<16x64xf32> -> vector<16x64xf32>
    %c0_56 = arith.constant 0 : index
    %c0_57 = arith.constant 0 : index
    %c0_58 = arith.constant 0 : index
    %149 = vector.load %arg12[%c0_56, %c0_57, %c0_58] : memref<2x1x64xf32, #tpu.memory_space<vmem>>, vector<1x1x64xf32>
    %150 = vector.shape_cast %149 : vector<1x1x64xf32> to vector<1x64xf32>
    %151 = vector.broadcast %150 : vector<1x64xf32> to vector<16x64xf32>
    %152 = arith.addf %148, %151 : vector<16x64xf32>
    %153 = arith.mulf %152, %152 : vector<16x64xf32>
    %154 = arith.mulf %152, %153 : vector<16x64xf32>
    %cst_59 = arith.constant 4.471500e-02 : f32
    %155 = vector.broadcast %cst_59 : f32 to vector<16x64xf32>
    %156 = arith.mulf %155, %154 : vector<16x64xf32>
    %157 = arith.addf %152, %156 : vector<16x64xf32>
    %cst_60 = arith.constant 0.797884583 : f32
    %158 = vector.broadcast %cst_60 : f32 to vector<16x64xf32>
    %159 = arith.mulf %158, %157 : vector<16x64xf32>
    %160 = math.tanh %159 : vector<16x64xf32>
    %cst_61 = arith.constant 1.000000e+00 : f32
    %161 = vector.broadcast %cst_61 : f32 to vector<16x64xf32>
    %162 = arith.addf %161, %160 : vector<16x64xf32>
    %cst_62 = arith.constant 5.000000e-01 : f32
    %163 = vector.broadcast %cst_62 : f32 to vector<16x64xf32>
    %164 = arith.mulf %163, %162 : vector<16x64xf32>
    %165 = arith.mulf %152, %164 : vector<16x64xf32>
    %c0_63 = arith.constant 0 : index
    %c0_64 = arith.constant 0 : index
    %c0_65 = arith.constant 0 : index
    %166 = vector.load %arg13[%c0_63, %c0_64, %c0_65] : memref<2x64x32xf32, #tpu.memory_space<vmem>>, vector<1x64x32xf32>
    %167 = vector.shape_cast %166 : vector<1x64x32xf32> to vector<64x32xf32>
    %cst_66 = arith.constant dense<0.000000e+00> : vector<16x32xf32>
    %168 = tpu.matmul %165, %167, %cst_66 {dimension_numbers = #tpu.dot_dimension_numbers<[1], [0], [0], [1], [0, 0, 1, 1], [], []>} : vector<16x64xf32>, vector<64x32xf32>, vector<16x32xf32> -> vector<16x32xf32>
    %c0_67 = arith.constant 0 : index
    %c0_68 = arith.constant 0 : index
    %c0_69 = arith.constant 0 : index
    %169 = vector.load %arg14[%c0_67, %c0_68, %c0_69] : memref<2x1x32xf32, #tpu.memory_space<vmem>>, vector<1x1x32xf32>
    %170 = vector.shape_cast %169 : vector<1x1x32xf32> to vector<1x32xf32>
    %171 = vector.broadcast %170 : vector<1x32xf32> to vector<16x32xf32>
    %172 = arith.addf %168, %171 : vector<16x32xf32>
    %173 = arith.addf %172, %145 : vector<16x32xf32>
    %c0_70 = arith.constant 0 : index
    %c0_71 = arith.constant 0 : index
    %c0_72 = arith.constant 0 : index
    %174 = vector.load %arg15[%c0_70, %c0_71, %c0_72] : memref<2x1x32xf32, #tpu.memory_space<vmem>>, vector<1x1x32xf32>
    %175 = vector.shape_cast %174 : vector<1x1x32xf32> to vector<1x32xf32>
    %c0_73 = arith.constant 0 : index
    %c0_74 = arith.constant 0 : index
    %c0_75 = arith.constant 0 : index
    %176 = vector.load %arg16[%c0_73, %c0_74, %c0_75] : memref<2x1x32xf32, #tpu.memory_space<vmem>>, vector<1x1x32xf32>
    %177 = vector.shape_cast %176 : vector<1x1x32xf32> to vector<1x32xf32>
    %cst_76 = arith.constant dense<0.000000e+00> : vector<16xf32>
    %178 = vector.multi_reduction <add>, %173, %cst_76 [1] : vector<16x32xf32> to vector<16xf32>
    %179 = vector.shape_cast %178 : vector<16xf32> to vector<16x1xf32>
    %cst_77 = arith.constant 3.200000e+01 : f32
    %180 = vector.broadcast %cst_77 : f32 to vector<16x1xf32>
    %181 = arith.divf %179, %180 : vector<16x1xf32>
    %182 = vector.broadcast %181 : vector<16x1xf32> to vector<16x32xf32>
    %183 = arith.subf %173, %182 : vector<16x32xf32>
    %184 = vector.broadcast %181 : vector<16x1xf32> to vector<16x32xf32>
    %185 = arith.subf %173, %184 : vector<16x32xf32>
    %186 = arith.mulf %183, %185 : vector<16x32xf32>
    %cst_78 = arith.constant dense<0.000000e+00> : vector<16xf32>
    %187 = vector.multi_reduction <add>, %186, %cst_78 [1] : vector<16x32xf32> to vector<16xf32>
    %188 = vector.shape_cast %187 : vector<16xf32> to vector<16x1xf32>
    %cst_79 = arith.constant 3.200000e+01 : f32
    %189 = vector.broadcast %cst_79 : f32 to vector<16x1xf32>
    %190 = arith.divf %188, %189 : vector<16x1xf32>
    %191 = vector.broadcast %181 : vector<16x1xf32> to vector<16x32xf32>
    %192 = arith.subf %173, %191 : vector<16x32xf32>
    %cst_80 = arith.constant 9.99999974E-6 : f32
    %193 = vector.broadcast %cst_80 : f32 to vector<16x1xf32>
    %194 = arith.addf %190, %193 : vector<16x1xf32>
    %195 = math.rsqrt %194 : vector<16x1xf32>
    %196 = vector.broadcast %195 : vector<16x1xf32> to vector<16x32xf32>
    %197 = arith.mulf %192, %196 : vector<16x32xf32>
    %198 = vector.broadcast %175 : vector<1x32xf32> to vector<16x32xf32>
    %199 = arith.mulf %197, %198 : vector<16x32xf32>
    %200 = vector.broadcast %177 : vector<1x32xf32> to vector<16x32xf32>
    %201 = arith.addf %199, %200 : vector<16x32xf32>
    %c1 = arith.constant 1 : index
    %c0_81 = arith.constant 0 : index
    %c0_82 = arith.constant 0 : index
    %202 = vector.load %arg5[%c1, %c0_81, %c0_82] : memref<2x32x96xf32, #tpu.memory_space<vmem>>, vector<1x32x96xf32>
    %203 = vector.shape_cast %202 : vector<1x32x96xf32> to vector<32x96xf32>
    %cst_83 = arith.constant dense<0.000000e+00> : vector<16x96xf32>
    %204 = tpu.matmul %201, %203, %cst_83 {dimension_numbers = #tpu.dot_dimension_numbers<[1], [0], [0], [1], [0, 0, 1, 1], [], []>} : vector<16x32xf32>, vector<32x96xf32>, vector<16x96xf32> -> vector<16x96xf32>
    %c1_84 = arith.constant 1 : index
    %c0_85 = arith.constant 0 : index
    %c0_86 = arith.constant 0 : index
    %205 = vector.load %arg6[%c1_84, %c0_85, %c0_86] : memref<2x1x96xf32, #tpu.memory_space<vmem>>, vector<1x1x96xf32>
    %206 = vector.shape_cast %205 : vector<1x1x96xf32> to vector<1x96xf32>
    %207 = vector.broadcast %206 : vector<1x96xf32> to vector<16x96xf32>
    %208 = arith.addf %204, %207 : vector<16x96xf32>
    %209 = vector.extract_strided_slice %208 {offsets = [0, 0], sizes = [8, 96], strides = [1, 1]} : vector<16x96xf32> to vector<8x96xf32>
    %210 = vector.extract_strided_slice %27 {offsets = [0, 0], sizes = [1, 8], strides = [1, 1]} : vector<2x8xf32> to vector<1x8xf32>
    %211 = vector.extract_strided_slice %209 {offsets = [0, 0], sizes = [8, 16], strides = [1, 1]} : vector<8x96xf32> to vector<8x16xf32>
    %212 = vector.extract_strided_slice %209 {offsets = [0, 32], sizes = [8, 16], strides = [1, 1]} : vector<8x96xf32> to vector<8x16xf32>
    %213 = vector.extract_strided_slice %209 {offsets = [0, 64], sizes = [8, 16], strides = [1, 1]} : vector<8x96xf32> to vector<8x16xf32>
    %cst_87 = arith.constant dense<0.000000e+00> : vector<8x8xf32>
    %214 = tpu.matmul %211, %212, %cst_87 {dimension_numbers = #tpu.dot_dimension_numbers<[1], [1], [0], [0], [0, 0, 1, 0], [], []>} : vector<8x16xf32>, vector<8x16xf32>, vector<8x8xf32> -> vector<8x8xf32>
    %215 = vector.broadcast %210 : vector<1x8xf32> to vector<8x8xf32>
    %216 = arith.addf %214, %215 : vector<8x8xf32>
    %cst_88 = arith.constant dense<0xFF800000> : vector<8xf32>
    %217 = vector.multi_reduction <maximumf>, %216, %cst_88 [1] : vector<8x8xf32> to vector<8xf32>
    %218 = vector.shape_cast %217 : vector<8xf32> to vector<8x1xf32>
    %219 = vector.broadcast %218 : vector<8x1xf32> to vector<8x8xf32>
    %220 = arith.subf %216, %219 : vector<8x8xf32>
    %221 = math.exp %220 : vector<8x8xf32>
    %cst_89 = arith.constant dense<0.000000e+00> : vector<8xf32>
    %222 = vector.multi_reduction <add>, %221, %cst_89 [1] : vector<8x8xf32> to vector<8xf32>
    %223 = vector.shape_cast %222 : vector<8xf32> to vector<8x1xf32>
    %224 = tpu.reciprocal %223 {approx = true} : vector<8x1xf32> -> vector<8x1xf32>
    %225 = vector.broadcast %224 : vector<8x1xf32> to vector<8x8xf32>
    %226 = arith.mulf %221, %225 : vector<8x8xf32>
    %cst_90 = arith.constant dense<0.000000e+00> : vector<8x16xf32>
    %227 = tpu.matmul %226, %213, %cst_90 {dimension_numbers = #tpu.dot_dimension_numbers<[1], [0], [0], [1], [0, 0, 1, 1], [], []>} : vector<8x8xf32>, vector<8x16xf32>, vector<8x16xf32> -> vector<8x16xf32>
    %228 = vector.extract_strided_slice %209 {offsets = [0, 16], sizes = [8, 16], strides = [1, 1]} : vector<8x96xf32> to vector<8x16xf32>
    %229 = vector.extract_strided_slice %209 {offsets = [0, 48], sizes = [8, 16], strides = [1, 1]} : vector<8x96xf32> to vector<8x16xf32>
    %230 = vector.extract_strided_slice %209 {offsets = [0, 80], sizes = [8, 16], strides = [1, 1]} : vector<8x96xf32> to vector<8x16xf32>
    %cst_91 = arith.constant dense<0.000000e+00> : vector<8x8xf32>
    %231 = tpu.matmul %228, %229, %cst_91 {dimension_numbers = #tpu.dot_dimension_numbers<[1], [1], [0], [0], [0, 0, 1, 0], [], []>} : vector<8x16xf32>, vector<8x16xf32>, vector<8x8xf32> -> vector<8x8xf32>
    %232 = vector.broadcast %210 : vector<1x8xf32> to vector<8x8xf32>
    %233 = arith.addf %231, %232 : vector<8x8xf32>
    %cst_92 = arith.constant dense<0xFF800000> : vector<8xf32>
    %234 = vector.multi_reduction <maximumf>, %233, %cst_92 [1] : vector<8x8xf32> to vector<8xf32>
    %235 = vector.shape_cast %234 : vector<8xf32> to vector<8x1xf32>
    %236 = vector.broadcast %235 : vector<8x1xf32> to vector<8x8xf32>
    %237 = arith.subf %233, %236 : vector<8x8xf32>
    %238 = math.exp %237 : vector<8x8xf32>
    %cst_93 = arith.constant dense<0.000000e+00> : vector<8xf32>
    %239 = vector.multi_reduction <add>, %238, %cst_93 [1] : vector<8x8xf32> to vector<8xf32>
    %240 = vector.shape_cast %239 : vector<8xf32> to vector<8x1xf32>
    %241 = tpu.reciprocal %240 {approx = true} : vector<8x1xf32> -> vector<8x1xf32>
    %242 = vector.broadcast %241 : vector<8x1xf32> to vector<8x8xf32>
    %243 = arith.mulf %238, %242 : vector<8x8xf32>
    %cst_94 = arith.constant dense<0.000000e+00> : vector<8x16xf32>
    %244 = tpu.matmul %243, %230, %cst_94 {dimension_numbers = #tpu.dot_dimension_numbers<[1], [0], [0], [1], [0, 0, 1, 1], [], []>} : vector<8x8xf32>, vector<8x16xf32>, vector<8x16xf32> -> vector<8x16xf32>
    %245 = tpu.concatenate %227, %244 in 1 : vector<8x16xf32>, vector<8x16xf32> -> vector<8x32xf32>
    %246 = vector.extract_strided_slice %208 {offsets = [8, 0], sizes = [8, 96], strides = [1, 1]} : vector<16x96xf32> to vector<8x96xf32>
    %247 = vector.extract_strided_slice %27 {offsets = [1, 0], sizes = [1, 8], strides = [1, 1]} : vector<2x8xf32> to vector<1x8xf32>
    %248 = vector.extract_strided_slice %246 {offsets = [0, 0], sizes = [8, 16], strides = [1, 1]} : vector<8x96xf32> to vector<8x16xf32>
    %249 = vector.extract_strided_slice %246 {offsets = [0, 32], sizes = [8, 16], strides = [1, 1]} : vector<8x96xf32> to vector<8x16xf32>
    %250 = vector.extract_strided_slice %246 {offsets = [0, 64], sizes = [8, 16], strides = [1, 1]} : vector<8x96xf32> to vector<8x16xf32>
    %cst_95 = arith.constant dense<0.000000e+00> : vector<8x8xf32>
    %251 = tpu.matmul %248, %249, %cst_95 {dimension_numbers = #tpu.dot_dimension_numbers<[1], [1], [0], [0], [0, 0, 1, 0], [], []>} : vector<8x16xf32>, vector<8x16xf32>, vector<8x8xf32> -> vector<8x8xf32>
    %252 = vector.broadcast %247 : vector<1x8xf32> to vector<8x8xf32>
    %253 = arith.addf %251, %252 : vector<8x8xf32>
    %cst_96 = arith.constant dense<0xFF800000> : vector<8xf32>
    %254 = vector.multi_reduction <maximumf>, %253, %cst_96 [1] : vector<8x8xf32> to vector<8xf32>
    %255 = vector.shape_cast %254 : vector<8xf32> to vector<8x1xf32>
    %256 = vector.broadcast %255 : vector<8x1xf32> to vector<8x8xf32>
    %257 = arith.subf %253, %256 : vector<8x8xf32>
    %258 = math.exp %257 : vector<8x8xf32>
    %cst_97 = arith.constant dense<0.000000e+00> : vector<8xf32>
    %259 = vector.multi_reduction <add>, %258, %cst_97 [1] : vector<8x8xf32> to vector<8xf32>
    %260 = vector.shape_cast %259 : vector<8xf32> to vector<8x1xf32>
    %261 = tpu.reciprocal %260 {approx = true} : vector<8x1xf32> -> vector<8x1xf32>
    %262 = vector.broadcast %261 : vector<8x1xf32> to vector<8x8xf32>
    %263 = arith.mulf %258, %262 : vector<8x8xf32>
    %cst_98 = arith.constant dense<0.000000e+00> : vector<8x16xf32>
    %264 = tpu.matmul %263, %250, %cst_98 {dimension_numbers = #tpu.dot_dimension_numbers<[1], [0], [0], [1], [0, 0, 1, 1], [], []>} : vector<8x8xf32>, vector<8x16xf32>, vector<8x16xf32> -> vector<8x16xf32>
    %265 = vector.extract_strided_slice %246 {offsets = [0, 16], sizes = [8, 16], strides = [1, 1]} : vector<8x96xf32> to vector<8x16xf32>
    %266 = vector.extract_strided_slice %246 {offsets = [0, 48], sizes = [8, 16], strides = [1, 1]} : vector<8x96xf32> to vector<8x16xf32>
    %267 = vector.extract_strided_slice %246 {offsets = [0, 80], sizes = [8, 16], strides = [1, 1]} : vector<8x96xf32> to vector<8x16xf32>
    %cst_99 = arith.constant dense<0.000000e+00> : vector<8x8xf32>
    %268 = tpu.matmul %265, %266, %cst_99 {dimension_numbers = #tpu.dot_dimension_numbers<[1], [1], [0], [0], [0, 0, 1, 0], [], []>} : vector<8x16xf32>, vector<8x16xf32>, vector<8x8xf32> -> vector<8x8xf32>
    %269 = vector.broadcast %247 : vector<1x8xf32> to vector<8x8xf32>
    %270 = arith.addf %268, %269 : vector<8x8xf32>
    %cst_100 = arith.constant dense<0xFF800000> : vector<8xf32>
    %271 = vector.multi_reduction <maximumf>, %270, %cst_100 [1] : vector<8x8xf32> to vector<8xf32>
    %272 = vector.shape_cast %271 : vector<8xf32> to vector<8x1xf32>
    %273 = vector.broadcast %272 : vector<8x1xf32> to vector<8x8xf32>
    %274 = arith.subf %270, %273 : vector<8x8xf32>
    %275 = math.exp %274 : vector<8x8xf32>
    %cst_101 = arith.constant dense<0.000000e+00> : vector<8xf32>
    %276 = vector.multi_reduction <add>, %275, %cst_101 [1] : vector<8x8xf32> to vector<8xf32>
    %277 = vector.shape_cast %276 : vector<8xf32> to vector<8x1xf32>
    %278 = tpu.reciprocal %277 {approx = true} : vector<8x1xf32> -> vector<8x1xf32>
    %279 = vector.broadcast %278 : vector<8x1xf32> to vector<8x8xf32>
    %280 = arith.mulf %275, %279 : vector<8x8xf32>
    %cst_102 = arith.constant dense<0.000000e+00> : vector<8x16xf32>
    %281 = tpu.matmul %280, %267, %cst_102 {dimension_numbers = #tpu.dot_dimension_numbers<[1], [0], [0], [1], [0, 0, 1, 1], [], []>} : vector<8x8xf32>, vector<8x16xf32>, vector<8x16xf32> -> vector<8x16xf32>
    %282 = tpu.concatenate %264, %281 in 1 : vector<8x16xf32>, vector<8x16xf32> -> vector<8x32xf32>
    %283 = tpu.concatenate %245, %282 in 0 : vector<8x32xf32>, vector<8x32xf32> -> vector<16x32xf32>
    %c1_103 = arith.constant 1 : index
    %c0_104 = arith.constant 0 : index
    %c0_105 = arith.constant 0 : index
    %284 = vector.load %arg7[%c1_103, %c0_104, %c0_105] : memref<2x32x32xf32, #tpu.memory_space<vmem>>, vector<1x32x32xf32>
    %285 = vector.shape_cast %284 : vector<1x32x32xf32> to vector<32x32xf32>
    %cst_106 = arith.constant dense<0.000000e+00> : vector<16x32xf32>
    %286 = tpu.matmul %283, %285, %cst_106 {dimension_numbers = #tpu.dot_dimension_numbers<[1], [0], [0], [1], [0, 0, 1, 1], [], []>} : vector<16x32xf32>, vector<32x32xf32>, vector<16x32xf32> -> vector<16x32xf32>
    %c1_107 = arith.constant 1 : index
    %c0_108 = arith.constant 0 : index
    %c0_109 = arith.constant 0 : index
    %287 = vector.load %arg8[%c1_107, %c0_108, %c0_109] : memref<2x1x32xf32, #tpu.memory_space<vmem>>, vector<1x1x32xf32>
    %288 = vector.shape_cast %287 : vector<1x1x32xf32> to vector<1x32xf32>
    %289 = vector.broadcast %288 : vector<1x32xf32> to vector<16x32xf32>
    %290 = arith.addf %286, %289 : vector<16x32xf32>
    %291 = arith.addf %290, %201 : vector<16x32xf32>
    %c1_110 = arith.constant 1 : index
    %c0_111 = arith.constant 0 : index
    %c0_112 = arith.constant 0 : index
    %292 = vector.load %arg9[%c1_110, %c0_111, %c0_112] : memref<2x1x32xf32, #tpu.memory_space<vmem>>, vector<1x1x32xf32>
    %293 = vector.shape_cast %292 : vector<1x1x32xf32> to vector<1x32xf32>
    %c1_113 = arith.constant 1 : index
    %c0_114 = arith.constant 0 : index
    %c0_115 = arith.constant 0 : index
    %294 = vector.load %arg10[%c1_113, %c0_114, %c0_115] : memref<2x1x32xf32, #tpu.memory_space<vmem>>, vector<1x1x32xf32>
    %295 = vector.shape_cast %294 : vector<1x1x32xf32> to vector<1x32xf32>
    %cst_116 = arith.constant dense<0.000000e+00> : vector<16xf32>
    %296 = vector.multi_reduction <add>, %291, %cst_116 [1] : vector<16x32xf32> to vector<16xf32>
    %297 = vector.shape_cast %296 : vector<16xf32> to vector<16x1xf32>
    %cst_117 = arith.constant 3.200000e+01 : f32
    %298 = vector.broadcast %cst_117 : f32 to vector<16x1xf32>
    %299 = arith.divf %297, %298 : vector<16x1xf32>
    %300 = vector.broadcast %299 : vector<16x1xf32> to vector<16x32xf32>
    %301 = arith.subf %291, %300 : vector<16x32xf32>
    %302 = vector.broadcast %299 : vector<16x1xf32> to vector<16x32xf32>
    %303 = arith.subf %291, %302 : vector<16x32xf32>
    %304 = arith.mulf %301, %303 : vector<16x32xf32>
    %cst_118 = arith.constant dense<0.000000e+00> : vector<16xf32>
    %305 = vector.multi_reduction <add>, %304, %cst_118 [1] : vector<16x32xf32> to vector<16xf32>
    %306 = vector.shape_cast %305 : vector<16xf32> to vector<16x1xf32>
    %cst_119 = arith.constant 3.200000e+01 : f32
    %307 = vector.broadcast %cst_119 : f32 to vector<16x1xf32>
    %308 = arith.divf %306, %307 : vector<16x1xf32>
    %309 = vector.broadcast %299 : vector<16x1xf32> to vector<16x32xf32>
    %310 = arith.subf %291, %309 : vector<16x32xf32>
    %cst_120 = arith.constant 9.99999974E-6 : f32
    %311 = vector.broadcast %cst_120 : f32 to vector<16x1xf32>
    %312 = arith.addf %308, %311 : vector<16x1xf32>
    %313 = math.rsqrt %312 : vector<16x1xf32>
    %314 = vector.broadcast %313 : vector<16x1xf32> to vector<16x32xf32>
    %315 = arith.mulf %310, %314 : vector<16x32xf32>
    %316 = vector.broadcast %293 : vector<1x32xf32> to vector<16x32xf32>
    %317 = arith.mulf %315, %316 : vector<16x32xf32>
    %318 = vector.broadcast %295 : vector<1x32xf32> to vector<16x32xf32>
    %319 = arith.addf %317, %318 : vector<16x32xf32>
    %c1_121 = arith.constant 1 : index
    %c0_122 = arith.constant 0 : index
    %c0_123 = arith.constant 0 : index
    %320 = vector.load %arg11[%c1_121, %c0_122, %c0_123] : memref<2x32x64xf32, #tpu.memory_space<vmem>>, vector<1x32x64xf32>
    %321 = vector.shape_cast %320 : vector<1x32x64xf32> to vector<32x64xf32>
    %cst_124 = arith.constant dense<0.000000e+00> : vector<16x64xf32>
    %322 = tpu.matmul %319, %321, %cst_124 {dimension_numbers = #tpu.dot_dimension_numbers<[1], [0], [0], [1], [0, 0, 1, 1], [], []>} : vector<16x32xf32>, vector<32x64xf32>, vector<16x64xf32> -> vector<16x64xf32>
    %c1_125 = arith.constant 1 : index
    %c0_126 = arith.constant 0 : index
    %c0_127 = arith.constant 0 : index
    %323 = vector.load %arg12[%c1_125, %c0_126, %c0_127] : memref<2x1x64xf32, #tpu.memory_space<vmem>>, vector<1x1x64xf32>
    %324 = vector.shape_cast %323 : vector<1x1x64xf32> to vector<1x64xf32>
    %325 = vector.broadcast %324 : vector<1x64xf32> to vector<16x64xf32>
    %326 = arith.addf %322, %325 : vector<16x64xf32>
    %327 = arith.mulf %326, %326 : vector<16x64xf32>
    %328 = arith.mulf %326, %327 : vector<16x64xf32>
    %cst_128 = arith.constant 4.471500e-02 : f32
    %329 = vector.broadcast %cst_128 : f32 to vector<16x64xf32>
    %330 = arith.mulf %329, %328 : vector<16x64xf32>
    %331 = arith.addf %326, %330 : vector<16x64xf32>
    %cst_129 = arith.constant 0.797884583 : f32
    %332 = vector.broadcast %cst_129 : f32 to vector<16x64xf32>
    %333 = arith.mulf %332, %331 : vector<16x64xf32>
    %334 = math.tanh %333 : vector<16x64xf32>
    %cst_130 = arith.constant 1.000000e+00 : f32
    %335 = vector.broadcast %cst_130 : f32 to vector<16x64xf32>
    %336 = arith.addf %335, %334 : vector<16x64xf32>
    %cst_131 = arith.constant 5.000000e-01 : f32
    %337 = vector.broadcast %cst_131 : f32 to vector<16x64xf32>
    %338 = arith.mulf %337, %336 : vector<16x64xf32>
    %339 = arith.mulf %326, %338 : vector<16x64xf32>
    %c1_132 = arith.constant 1 : index
    %c0_133 = arith.constant 0 : index
    %c0_134 = arith.constant 0 : index
    %340 = vector.load %arg13[%c1_132, %c0_133, %c0_134] : memref<2x64x32xf32, #tpu.memory_space<vmem>>, vector<1x64x32xf32>
    %341 = vector.shape_cast %340 : vector<1x64x32xf32> to vector<64x32xf32>
    %cst_135 = arith.constant dense<0.000000e+00> : vector<16x32xf32>
    %342 = tpu.matmul %339, %341, %cst_135 {dimension_numbers = #tpu.dot_dimension_numbers<[1], [0], [0], [1], [0, 0, 1, 1], [], []>} : vector<16x64xf32>, vector<64x32xf32>, vector<16x32xf32> -> vector<16x32xf32>
    %c1_136 = arith.constant 1 : index
    %c0_137 = arith.constant 0 : index
    %c0_138 = arith.constant 0 : index
    %343 = vector.load %arg14[%c1_136, %c0_137, %c0_138] : memref<2x1x32xf32, #tpu.memory_space<vmem>>, vector<1x1x32xf32>
    %344 = vector.shape_cast %343 : vector<1x1x32xf32> to vector<1x32xf32>
    %345 = vector.broadcast %344 : vector<1x32xf32> to vector<16x32xf32>
    %346 = arith.addf %342, %345 : vector<16x32xf32>
    %347 = arith.addf %346, %319 : vector<16x32xf32>
    %c1_139 = arith.constant 1 : index
    %c0_140 = arith.constant 0 : index
    %c0_141 = arith.constant 0 : index
    %348 = vector.load %arg15[%c1_139, %c0_140, %c0_141] : memref<2x1x32xf32, #tpu.memory_space<vmem>>, vector<1x1x32xf32>
    %349 = vector.shape_cast %348 : vector<1x1x32xf32> to vector<1x32xf32>
    %c1_142 = arith.constant 1 : index
    %c0_143 = arith.constant 0 : index
    %c0_144 = arith.constant 0 : index
    %350 = vector.load %arg16[%c1_142, %c0_143, %c0_144] : memref<2x1x32xf32, #tpu.memory_space<vmem>>, vector<1x1x32xf32>
    %351 = vector.shape_cast %350 : vector<1x1x32xf32> to vector<1x32xf32>
    %cst_145 = arith.constant dense<0.000000e+00> : vector<16xf32>
    %352 = vector.multi_reduction <add>, %347, %cst_145 [1] : vector<16x32xf32> to vector<16xf32>
    %353 = vector.shape_cast %352 : vector<16xf32> to vector<16x1xf32>
    %cst_146 = arith.constant 3.200000e+01 : f32
    %354 = vector.broadcast %cst_146 : f32 to vector<16x1xf32>
    %355 = arith.divf %353, %354 : vector<16x1xf32>
    %356 = vector.broadcast %355 : vector<16x1xf32> to vector<16x32xf32>
    %357 = arith.subf %347, %356 : vector<16x32xf32>
    %358 = vector.broadcast %355 : vector<16x1xf32> to vector<16x32xf32>
    %359 = arith.subf %347, %358 : vector<16x32xf32>
    %360 = arith.mulf %357, %359 : vector<16x32xf32>
    %cst_147 = arith.constant dense<0.000000e+00> : vector<16xf32>
    %361 = vector.multi_reduction <add>, %360, %cst_147 [1] : vector<16x32xf32> to vector<16xf32>
    %362 = vector.shape_cast %361 : vector<16xf32> to vector<16x1xf32>
    %cst_148 = arith.constant 3.200000e+01 : f32
    %363 = vector.broadcast %cst_148 : f32 to vector<16x1xf32>
    %364 = arith.divf %362, %363 : vector<16x1xf32>
    %365 = vector.broadcast %355 : vector<16x1xf32> to vector<16x32xf32>
    %366 = arith.subf %347, %365 : vector<16x32xf32>
    %cst_149 = arith.constant 9.99999974E-6 : f32
    %367 = vector.broadcast %cst_149 : f32 to vector<16x1xf32>
    %368 = arith.addf %364, %367 : vector<16x1xf32>
    %369 = math.rsqrt %368 : vector<16x1xf32>
    %370 = vector.broadcast %369 : vector<16x1xf32> to vector<16x32xf32>
    %371 = arith.mulf %366, %370 : vector<16x32xf32>
    %372 = vector.broadcast %349 : vector<1x32xf32> to vector<16x32xf32>
    %373 = arith.mulf %371, %372 : vector<16x32xf32>
    %374 = vector.broadcast %351 : vector<1x32xf32> to vector<16x32xf32>
    %375 = arith.addf %373, %374 : vector<16x32xf32>
    %376 = vector.extract_strided_slice %375 {offsets = [0, 0], sizes = [1, 32], strides = [1, 1]} : vector<16x32xf32> to vector<1x32xf32>
    %377 = vector.extract_strided_slice %375 {offsets = [8, 0], sizes = [1, 32], strides = [1, 1]} : vector<16x32xf32> to vector<1x32xf32>
    %378 = tpu.concatenate %376, %377 in 0 : vector<1x32xf32>, vector<1x32xf32> -> vector<2x32xf32>
    %c0_150 = arith.constant 0 : index
    %c0_151 = arith.constant 0 : index
    %379 = vector.load %arg17[%c0_150, %c0_151] : memref<32x32xf32, #tpu.memory_space<vmem>>, vector<32x32xf32>
    %cst_152 = arith.constant dense<0.000000e+00> : vector<2x32xf32>
    %380 = tpu.matmul %378, %379, %cst_152 {dimension_numbers = #tpu.dot_dimension_numbers<[1], [0], [0], [1], [0, 0, 1, 1], [], []>} : vector<2x32xf32>, vector<32x32xf32>, vector<2x32xf32> -> vector<2x32xf32>
    %c0_153 = arith.constant 0 : index
    %c0_154 = arith.constant 0 : index
    %381 = vector.load %arg18[%c0_153, %c0_154] : memref<1x32xf32, #tpu.memory_space<vmem>>, vector<1x32xf32>
    %382 = vector.broadcast %381 : vector<1x32xf32> to vector<2x32xf32>
    %383 = arith.addf %380, %382 : vector<2x32xf32>
    %384 = math.tanh %383 : vector<2x32xf32>
    %c0_155 = arith.constant 0 : index
    %c0_156 = arith.constant 0 : index
    %385 = vector.load %arg19[%c0_155, %c0_156] : memref<32x128xf32, #tpu.memory_space<vmem>>, vector<32x128xf32>
    %cst_157 = arith.constant dense<0.000000e+00> : vector<2x128xf32>
    %386 = tpu.matmul %384, %385, %cst_157 {dimension_numbers = #tpu.dot_dimension_numbers<[1], [0], [0], [1], [0, 0, 1, 1], [], []>} : vector<2x32xf32>, vector<32x128xf32>, vector<2x128xf32> -> vector<2x128xf32>
    %c0_158 = arith.constant 0 : index
    %c0_159 = arith.constant 0 : index
    %387 = vector.load %arg20[%c0_158, %c0_159] : memref<1x128xf32, #tpu.memory_space<vmem>>, vector<1x128xf32>
    %388 = vector.broadcast %387 : vector<1x128xf32> to vector<2x128xf32>
    %389 = arith.addf %386, %388 : vector<2x128xf32>
    %c0_160 = arith.constant 0 : index
    %c0_161 = arith.constant 0 : index
    %390 = vector.load %arg21[%c0_160, %c0_161] : memref<2x128xf32, #tpu.memory_space<vmem>>, vector<2x128xf32>
    tpu.vector_store %arg21[%c0_160, %c0_161], %389 {strides = array<i32>} : memref<2x128xf32, #tpu.memory_space<vmem>>, vector<2x128xf32>,
    return
  }
  func.func @transform_0(%arg0: i32) -> (i32, i32) {
    %c0_i32 = arith.constant 0 : i32
    %c0_i32_0 = arith.constant 0 : i32
    %c0_i32_1 = arith.constant 0 : i32
    return %c0_i32, %c0_i32_0 : i32, i32
  }
  func.func @transform_1(%arg0: i32) -> (i32, i32) {
    %c0_i32 = arith.constant 0 : i32
    %c0_i32_0 = arith.constant 0 : i32
    %c0_i32_1 = arith.constant 0 : i32
    return %c0_i32, %c0_i32_0 : i32, i32
  }
  func.func @transform_2(%arg0: i32) -> (i32, i32) {
    %c0_i32 = arith.constant 0 : i32
    %c0_i32_0 = arith.constant 0 : i32
    %c0_i32_1 = arith.constant 0 : i32
    return %c0_i32, %c0_i32_0 : i32, i32
  }
  func.func @transform_3(%arg0: i32) -> (i32, i32) {
    %c0_i32 = arith.constant 0 : i32
    %c0_i32_0 = arith.constant 0 : i32
    %c0_i32_1 = arith.constant 0 : i32
    return %c0_i32, %c0_i32_0 : i32, i32
  }
  func.func @transform_4(%arg0: i32) -> (i32, i32, i32) {
    %c0_i32 = arith.constant 0 : i32
    %c0_i32_0 = arith.constant 0 : i32
    %c0_i32_1 = arith.constant 0 : i32
    %c0_i32_2 = arith.constant 0 : i32
    return %c0_i32, %c0_i32_0, %c0_i32_1 : i32, i32, i32
  }
  func.func @transform_5(%arg0: i32) -> (i32, i32, i32) {
    %c0_i32 = arith.constant 0 : i32
    %c0_i32_0 = arith.constant 0 : i32
    %c0_i32_1 = arith.constant 0 : i32
    %c0_i32_2 = arith.constant 0 : i32
    return %c0_i32, %c0_i32_0, %c0_i32_1 : i32, i32, i32
  }
  func.func @transform_6(%arg0: i32) -> (i32, i32, i32) {
    %c0_i32 = arith.constant 0 : i32
    %c0_i32_0 = arith.constant 0 : i32
    %c0_i32_1 = arith.constant 0 : i32
    %c0_i32_2 = arith.constant 0 : i32
    return %c0_i32, %c0_i32_0, %c0_i32_1 : i32, i32, i32
  }
  func.func @transform_7(%arg0: i32) -> (i32, i32, i32) {
    %c0_i32 = arith.constant 0 : i32
    %c0_i32_0 = arith.constant 0 : i32
    %c0_i32_1 = arith.constant 0 : i32
    %c0_i32_2 = arith.constant 0 : i32
    return %c0_i32, %c0_i32_0, %c0_i32_1 : i32, i32, i32
  }
  func.func @transform_8(%arg0: i32) -> (i32, i32, i32) {
    %c0_i32 = arith.constant 0 : i32
    %c0_i32_0 = arith.constant 0 : i32
    %c0_i32_1 = arith.constant 0 : i32
    %c0_i32_2 = arith.constant 0 : i32
    return %c0_i32, %c0_i32_0, %c0_i32_1 : i32, i32, i32
  }
  func.func @transform_9(%arg0: i32) -> (i32, i32, i32) {
    %c0_i32 = arith.constant 0 : i32
    %c0_i32_0 = arith.constant 0 : i32
    %c0_i32_1 = arith.constant 0 : i32
    %c0_i32_2 = arith.constant 0 : i32
    return %c0_i32, %c0_i32_0, %c0_i32_1 : i32, i32, i32
  }
  func.func @transform_10(%arg0: i32) -> (i32, i32, i32) {
    %c0_i32 = arith.constant 0 : i32
    %c0_i32_0 = arith.constant 0 : i32
    %c0_i32_1 = arith.constant 0 : i32
    %c0_i32_2 = arith.constant 0 : i32
    return %c0_i32, %c0_i32_0, %c0_i32_1 : i32, i32, i32
  }
  func.func @transform_11(%arg0: i32) -> (i32, i32, i32) {
    %c0_i32 = arith.constant 0 : i32
    %c0_i32_0 = arith.constant 0 : i32
    %c0_i32_1 = arith.constant 0 : i32
    %c0_i32_2 = arith.constant 0 : i32
    return %c0_i32, %c0_i32_0, %c0_i32_1 : i32, i32, i32
  }
  func.func @transform_12(%arg0: i32) -> (i32, i32, i32) {
    %c0_i32 = arith.constant 0 : i32
    %c0_i32_0 = arith.constant 0 : i32
    %c0_i32_1 = arith.constant 0 : i32
    %c0_i32_2 = arith.constant 0 : i32
    return %c0_i32, %c0_i32_0, %c0_i32_1 : i32, i32, i32
  }
  func.func @transform_13(%arg0: i32) -> (i32, i32, i32) {
    %c0_i32 = arith.constant 0 : i32
    %c0_i32_0 = arith.constant 0 : i32
    %c0_i32_1 = arith.constant 0 : i32
    %c0_i32_2 = arith.constant 0 : i32
    return %c0_i32, %c0_i32_0, %c0_i32_1 : i32, i32, i32
  }
  func.func @transform_14(%arg0: i32) -> (i32, i32, i32) {
    %c0_i32 = arith.constant 0 : i32
    %c0_i32_0 = arith.constant 0 : i32
    %c0_i32_1 = arith.constant 0 : i32
    %c0_i32_2 = arith.constant 0 : i32
    return %c0_i32, %c0_i32_0, %c0_i32_1 : i32, i32, i32
  }
  func.func @transform_15(%arg0: i32) -> (i32, i32, i32) {
    %c0_i32 = arith.constant 0 : i32
    %c0_i32_0 = arith.constant 0 : i32
    %c0_i32_1 = arith.constant 0 : i32
    %c0_i32_2 = arith.constant 0 : i32
    return %c0_i32, %c0_i32_0, %c0_i32_1 : i32, i32, i32
  }
  func.func @transform_16(%arg0: i32) -> (i32, i32) {
    %c0_i32 = arith.constant 0 : i32
    %c0_i32_0 = arith.constant 0 : i32
    %c0_i32_1 = arith.constant 0 : i32
    return %c0_i32, %c0_i32_0 : i32, i32
  }
  func.func @transform_17(%arg0: i32) -> (i32, i32) {
    %c0_i32 = arith.constant 0 : i32
    %c0_i32_0 = arith.constant 0 : i32
    %c0_i32_1 = arith.constant 0 : i32
    return %c0_i32, %c0_i32_0 : i32, i32
  }
  func.func @transform_18(%arg0: i32) -> (i32, i32) {
    %c0_i32 = arith.constant 0 : i32
    %c0_i32_0 = arith.constant 0 : i32
    %c0_i32_1 = arith.constant 0 : i32
    return %c0_i32, %c0_i32_0 : i32, i32
  }
  func.func @transform_19(%arg0: i32) -> (i32, i32) {
    %c0_i32 = arith.constant 0 : i32
    %c0_i32_0 = arith.constant 0 : i32
    %c0_i32_1 = arith.constant 0 : i32
    return %c0_i32, %c0_i32_0 : i32, i32
  }
  func.func @transform_20(%arg0: i32) -> (i32, i32) {
    %c0_i32 = arith.constant 0 : i32
    %c0_i32_0 = arith.constant 0 : i32
    %c0_i32_1 = arith.constant 0 : i32
    return %c0_i32, %c0_i32_0 : i32, i32
  }
}

</mosaic_0001>

<bundles_post_ra>
// kernel: xlmr_classifier_forward.1
= control target key start
LH: loop header
LB: loop body
LE: loop exit
PB: predicated region body
PF: predicated region fallthrough
CT: control target
= control target key end

     0   :  { %s2048_s0 = inlined_call_operand.vmem [shape: f32[16,32], index: 0, kind: input, shape index: {}]   ;;  %s2049_s1 = inlined_call_operand.vmem [shape: f32[2,8], index: 1, kind: input, shape index: {}]   ;;  %s2050_s2 = inlined_call_operand.vmem [shape: f32[1,32], index: 2, kind: input, shape index: {}]   ;;  %s2051_s3 = inlined_call_operand.vmem [shape: f32[1,32], index: 3, kind: input, shape index: {}]   ;;  %s2052_s4 = inlined_call_operand.vmem [shape: f32[2,32,96], index: 4, kind: input, shape index: {}]   ;;  %s2053_s5 = inlined_call_operand.vmem [shape: f32[2,1,96], index: 5, kind: input, shape index: {}]   ;;  %s2054_s6 = inlined_call_operand.vmem [shape: f32[2,32,32], index: 6, kind: input, shape index: {}]   ;;  %s2055_s7 = inlined_call_operand.vmem [shape: f32[2,1,32], index: 7, kind: input, shape index: {}]   ;;  %s2056_s8 = inlined_call_operand.vmem [shape: f32[2,1,32], index: 8, kind: input, shape index: {}]   ;;  %s2057_s9 = inlined_call_operand.vmem [shape: f32[2,1,32], index: 9, kind: input, shape index: {}]   ;;  %s2058_s10 = inlined_call_operand.vmem [shape: f32[2,32,64], index: 10, kind: input, shape index: {}]   ;;  %s2059_s11 = inlined_call_operand.vmem [shape: f32[2,1,64], index: 11, kind: input, shape index: {}]   ;;  %s2060_s12 = inlined_call_operand.vmem [shape: f32[2,64,32], index: 12, kind: input, shape index: {}]   ;;  %s2061_s13 = inlined_call_operand.vmem [shape: f32[2,1,32], index: 13, kind: input, shape index: {}]   ;;  %s2062_s14 = inlined_call_operand.vmem [shape: f32[2,1,32], index: 14, kind: input, shape index: {}]   ;;  %s2063_s15 = inlined_call_operand.vmem [shape: f32[2,1,32], index: 15, kind: input, shape index: {}]   ;;  %s2064_s16 = inlined_call_operand.vmem [shape: f32[32,32], index: 16, kind: input, shape index: {}]   ;;  %s2065_s17 = inlined_call_operand.vmem [shape: f32[1,32], index: 17, kind: input, shape index: {}]   ;;  %s2066_s18 = inlined_call_operand.vmem [shape: f32[32,128], index: 18, kind: input, shape index: {}]   ;;  %s2067_s19 = inlined_call_operand.vmem [shape: f32[1,128], index: 19, kind: input, shape index: {}]   ;;  %s2068_s20 = inlined_call_operand.hbm [shape: f32[2,128], index: 20, kind: output, shape index: {}]  }
   0x1   :  { %2075 = sst [smem:[#allocation5_spill]] %s2048_s0 }
   0x2   :  { %2076 = sst [smem:[#allocation6_spill]] %s2049_s1 }
   0x3   :  { %2077 = sst [smem:[#allocation7_spill]] %s2050_s2 }
   0x4   :  { %2078 = sst [smem:[#allocation8_spill]] %s2051_s3 }
   0x5   :  { %2079 = sst [smem:[#allocation9_spill]] %s2052_s4 }
   0x6   :  { %s2080_s23 = sld [smem:[#allocation5_spill]]  ;;  %vm70_vm0 = vcmask 261120  }
   0xc   :  { %v66_v0 = vld [vmem:[%s2080_s23] sm:$0xff]  ;;  %v67_v1 = vld [vmem:[%s2080_s23 + $0x8] sm:$0xff] }
   0xd   :  { %v71_v2 = vsel %vm70_vm0, %v66_v0, 0.0  ;;  %v74_v3 = vsel %vm70_vm0, %v67_v1, 0.0 }
   0xe   :  { %72 = vadd.xlane.f32.xlu0 %v71_v2  ;;  %75 = vadd.xlane.f32.xlu1 %v74_v3 }
   0xf   :  { %25 = vsyncpa [#allocation3], 0  ;;  %v1531_v4 = vmov 32.0   ;;  %s2081_s26 = sld [smem:[#allocation9_spill]]  ;;  %v1423_v53 = vld [vmem:[%s2053_s5] ss:$0 sm:$0xff] }
  0x10   :  { %1441 = vrcp.f32 %v1531_v4  ;;  %s2082_s22 = sld [smem:[#allocation7_spill]]  ;;  %s1532_s27 = smov 112   ;;  %vm174_vm8 = vcmask 130048   ;;  %vm199_vm9 = vcmask 64512   ;;  %vm604_vm13 = vcmask 523264  }
  0x11   :  { %s2083_s2 = sld [smem:[#allocation8_spill]]  ;;  %s1533_s28 = smov 96  }
  0x12   :  { %s1534_s4 = smov 80   ;;  %s2084_s0 = sld [smem:[#allocation6_spill]] }
  0x13   :  { %s1535_s21 = smov 64   ;;  %s2073_s1 = smov 48  }
  0x15   :  { %v136_v21 = vld [vmem:[%s2081_s26 + $0x18] sm:$0xff]  ;;  %v135_v22 = vld [vmem:[%s2081_s26 + $0x10] sm:$0xff]  ;;  %v134_v23 = vld [vmem:[%s2081_s26 + $0x8] sm:$0xff] }
  0x16   :  { %v1442_v5 = vpop.eup %1441  ;;  %159 = vmatpush.msra.mxu0 %v136_v21  ;;  %v133_v24 = vld [vmem:[%s2081_s26] sm:$0xff] }
  0x17   :  { %v78_v6 = vmul.f32 32.0, %v1442_v5  ;;  %vm82_vm1 = vweird.f32 %v1442_v5  ;;  %v1421_v42 = vld [vmem:[%s2082_s22] ss:$0 sm:$0xff]  ;;  %s2071_s22 = smov 16  }
  0x18   :  { %160 = vmatpush.msra.mxu0 %v135_v22  ;;  %v1422_v46 = vld [vmem:[%s2083_s2] ss:$0 sm:$0xff] }
  0x19   :  { %v79_v7 = vsub.f32 1.0, %v78_v6  ;;  %v132_v60 = vld [vmem:[%s2084_s0] sm:$0x3] }
  0x1a   :  { %161 = vmatpush.msra.mxu0 %v134_v23  ;;  %v1699_v61 = vperm.slane %v132_v60, 0  ;;  %v1722_v23 = vperm.slane %v132_v60, 1  ;;  %v1424_v60 = vld [vmem:[%s2055_s7] ss:$0 sm:$0xff] }
  0x1b   :  { %v80_v8 = vmul.f32 %v1442_v5, %v79_v7 }
  0x1c   :  { %162 = vmatpush.msra.mxu0 %v133_v24 }
  0x1d   :  { %v81_v9 = vadd.f32 %v1442_v5, %v80_v8 }
  0x1f   :  { %v1652_v10 = vsel %vm82_vm1, %v1442_v5, %v81_v9 }
  0x81   :  { %v73_v11 = vpop.xlane.xlu0 %72  ;;  %v76_v12 = vpop.xlane.xlu1 %75 }
  0x82   :  { %v84_v13 = vmul.f32 %v1652_v10, %v73_v11  ;;  %v85_v14 = vmul.f32 %v1652_v10, %v76_v12 }
  0x84   :  { %v86_v15 = vsub.f32 %v66_v0, %v84_v13  ;;  %v87_v16 = vsub.f32 %v67_v1, %v85_v14 }
  0x86   :  { %v88_v17 = vmul.f32 %v86_v15, %v86_v15  ;;  %v89_v18 = vmul.f32 %v87_v16, %v87_v16 }
  0x88   :  { %v90_v19 = vsel %vm70_vm0, %v88_v17, 0.0  ;;  %v93_v20 = vsel %vm70_vm0, %v89_v18, 0.0 }
  0x89   :  { %91 = vadd.xlane.f32.xlu0 %v90_v19  ;;  %94 = vadd.xlane.f32.xlu1 %v93_v20 }
  0xfc   :  { %v92_v25 = vpop.xlane.xlu0 %91  ;;  %v95_v26 = vpop.xlane.xlu1 %94 }
  0xfd   :  { %v96_v27 = vmul.f32 %v92_v25, %v1652_v10  ;;  %v97_v28 = vmul.f32 %v95_v26, %v1652_v10 }
  0xff   :  { %v98_v29 = vadd.f32 1e-05, %v96_v27  ;;  %v99_v30 = vadd.f32 1e-05, %v97_v28 }
 0x101   :  { %1443 = vrsqrt.f32 %v98_v29  ;;  %vm116_vm2 = vweird.f32 %v99_v30  ;;  %vm106_vm5 = vweird.f32 %v98_v29 }
 0x102   :  { %1445 = vrsqrt.f32 %v99_v30 }
 0x107   :  { %v1444_v31 = vpop.eup %1443 }
 0x108   :  { %v1446_v32 = vpop.eup %1445  ;;  %v101_v33 = vmul.f32 %v1444_v31, %v98_v29  ;;  %vm107_vm4 = vweird.f32 %v1444_v31 }
 0x109   :  { %v111_v34 = vmul.f32 %v1446_v32, %v99_v30  ;;  %vm117_vm3 = vweird.f32 %v1446_v32  ;;  %vm108_vm7 = vmor %vm106_vm5, %vm107_vm4 }
 0x10a   :  { %v102_v35 = vmul.f32 %v1444_v31, %v101_v33  ;;  %vm118_vm6 = vmor %vm116_vm2, %vm117_vm3 }
 0x10b   :  { %v112_v36 = vmul.f32 %v1446_v32, %v111_v34 }
 0x10c   :  { %v103_v37 = vmul.f32 0.5, %v102_v35 }
 0x10d   :  { %v113_v38 = vmul.f32 0.5, %v112_v36 }
 0x10e   :  { %v104_v39 = vsub.f32 1.5, %v103_v37 }
 0x10f   :  { %v114_v40 = vsub.f32 1.5, %v113_v38 }
 0x110   :  { %v105_v41 = vmul.f32 %v1444_v31, %v104_v39 }
 0x111   :  { %v115_v43 = vmul.f32 %v1446_v32, %v114_v40 }
 0x112   :  { %v109_v44 = vsel %vm108_vm7, %v1444_v31, %v105_v41 }
 0x113   :  { %v120_v45 = vmul.f32 %v109_v44, %v86_v15  ;;  %v119_v47 = vsel %vm118_vm6, %v1446_v32, %v115_v43  ;;  %v444_v43 = vld [vmem:[%s2054_s6 + $0x10] sm:$0xff]  ;;  %v443_v44 = vld [vmem:[%s2054_s6 + $0x8] sm:$0xff] }
 0x114   :  { %v121_v49 = vmul.f32 %v119_v47, %v87_v16 }
 0x115   :  { %v125_v48 = vmul.f32 %v1421_v42, %v120_v45  ;;  %v442_v45 = vld [vmem:[%s2054_s6] sm:$0xff] }
 0x116   :  { %v126_v51 = vmul.f32 %v1421_v42, %v121_v49  ;;  %v445_v42 = vld [vmem:[%s2054_s6 + $0x18] sm:$0xff] }
 0x117   :  { %v1678_v50 = vadd.f32 %v1422_v46, %v125_v48 }
 0x118   :  { %v1682_v52 = vadd.f32 %v1422_v46, %v126_v51 }
 0x119   :  { %1343 = vmatmul.msk.f32.vlgmr.msra.gmra.mxu0 %vm70_vm0, %v1678_v50 }
 0x121   :  { %1344 = vmatmul.msk.f32.gmra.mxu0 %vm70_vm0, %v1682_v52 }
 0x196   :  { %v164_v54 = vpop.f32.mrf.mxu0 }
 0x197   :  { %v165_v55 = vadd.f32 %v1423_v53, %v164_v54 }
 0x199   :  { %237 = vrot.lane.b32.xlu0 %v165_v55, %s1532_s27  ;;  %172 = vrot.lane.b32.xlu2 %v165_v55, %s1533_s28 }
 0x19e   :  { %v167_v59 = vpop.f32.mrf.mxu0 }
 0x19f   :  { %v1703_v1 = vadd.f32 %v1423_v53, %v167_v59 }
 0x1a1   :  { %239 = vrot.lane.b32.xlu2 %v165_v55, %s1534_s4 }
 0x1f3   :  { %v173_v56 = vpop.permute.xlu2 %172 }
 0x1f4   :  { %1345 = vmatpush.xpose.msk.msrb.mxu0 %vm174_vm8, %v173_v56 }
 0x1f7   :  { %1346 = vmatmul.msk.f32.vlgmr.msrb.gmra.mxu0 %vm174_vm8, %v165_v55 }
 0x1fb   :  { %v240_v57 = vpop.permute.xlu2 %239 }
 0x1fc   :  { %1348 = vmatpush.xpose.msk.msra.mxu3 %vm174_vm8, %v240_v57 }
 0x20b   :  { %v238_v58 = vpop.permute.xlu0 %237 }
 0x20c   :  { %1349 = vmatmul.msk.f32.vlgmr.msra.gmra.mxu3 %vm174_vm8, %v238_v58 }
 0x274   :  { %v196_v62 = vpop.f32.mrf.mxu0 }
 0x275   :  { %v197_v63 = vadd.f32 %v196_v62, %v1699_v61 }
 0x277   :  { %v200_v0 = vsel %vm199_vm9, %v197_v63, -inf }
 0x278   :  { %201 = vmax.xlane.f32.xlu1 %v200_v0 }
 0x28f   :  { %v262_v2 = vpop.f32.mrf.mxu3 }
 0x290   :  { %v263_v3 = vadd.f32 %v262_v2, %v1699_v61 }
 0x291   :  { %309 = vrot.lane.b32.xlu1 %v1703_v1, %s1533_s28 }
 0x292   :  { %v265_v4 = vsel %vm199_vm9, %v263_v3, -inf }
 0x293   :  { %266 = vmax.xlane.f32.xlu2 %v265_v4 }
 0x2ab   :  { %211 = vrot.lane.b32.xlu2 %v165_v55, %s1535_s21 }
 0x2b3   :  { %374 = vrot.lane.b32.xlu2 %v1703_v1, %s1534_s4 }
 0x2bb   :  { %372 = vrot.lane.b32.xlu2 %v1703_v1, %s1532_s27 }
 0x2eb   :  { %v202_v5 = vpop.xlane.xlu1 %201 }
 0x2ec   :  { %v203_v6 = vsub.f32 %v197_v63, %v202_v5 }
 0x2ee   :  { %v204_v7 = vmul.f32 1.442695, %v203_v6 }
 0x2f0   :  { %1447 = vpow2.f32 %v204_v7 }
 0x2f6   :  { %v1448_v8 = vpop.eup %1447 }
 0x2f7   :  { %v206_v9 = vsel %vm199_vm9, %v1448_v8, 0.0 }
 0x2f8   :  { %207 = vadd.xlane.f32.xlu0 %v206_v9 }
 0x303   :  { %v310_v11 = vpop.permute.xlu1 %309 }
 0x304   :  { %1351 = vmatpush.xpose.msk.msra.mxu1 %vm174_vm8, %v310_v11 }
 0x306   :  { %v267_v12 = vpop.xlane.xlu2 %266 }
 0x307   :  { %v268_v13 = vsub.f32 %v263_v3, %v267_v12  ;;  %1352 = vmatmul.msk.f32.vlgmr.msra.gmra.mxu1 %vm174_vm8, %v1703_v1  ;;  %v539_v12 = vld [vmem:[%s2058_s10 + $0x10] sm:$0xff] }
 0x309   :  { %v269_v14 = vmul.f32 1.442695, %v268_v13  ;;  %v538_v13 = vld [vmem:[%s2058_s10 + $0x8] sm:$0xff] }
 0x30b   :  { %1449 = vpow2.f32 %v269_v14  ;;  %v537_v14 = vld [vmem:[%s2058_s10] sm:$0xff] }
 0x30c   :  { %276 = vrot.lane.b32.xlu0 %v165_v55, %s2073_s1 }
 0x30e   :  { %v212_v15 = vpop.permute.xlu2 %211 }
 0x30f   :  { %232 = vmatpush.msra.mxu2 %v212_v15 }
 0x311   :  { %v1450_v16 = vpop.eup %1449 }
 0x312   :  { %v271_v17 = vsel %vm199_vm9, %v1450_v16, 0.0 }
 0x313   :  { %272 = vadd.xlane.f32.xlu1 %v271_v17 }
 0x316   :  { %v375_v22 = vpop.permute.xlu2 %374 }
 0x31e   :  { %v373_v30 = vpop.permute.xlu2 %372 }
 0x36b   :  { %v208_v18 = vpop.xlane.xlu0 %207 }
 0x36c   :  { %1451 = vrcp.f32 %v208_v18 }
 0x372   :  { %v1452_v19 = vpop.eup %1451 }
 0x373   :  { %v210_v20 = vmul.f32 %v1452_v19, %v1448_v8 }
 0x375   :  { %1347 = vmatmul.msk.f32.vlgmr.msra.gmra.mxu2 %vm199_vm9, %v210_v20 }
 0x37e   :  { %v277_v21 = vpop.permute.xlu0 %276 }
 0x37f   :  { %297 = vmatpush.msrb.mxu2 %v277_v21 }
 0x381   :  { %1354 = vmatpush.xpose.msk.msra.mxu2 %vm174_vm8, %v375_v22 }
 0x384   :  { %v332_v24 = vpop.f32.mrf.mxu1 }
 0x385   :  { %v333_v25 = vadd.f32 %v332_v24, %v1722_v23 }
 0x386   :  { %v273_v26 = vpop.xlane.xlu1 %272 }
 0x387   :  { %1453 = vrcp.f32 %v273_v26  ;;  %v335_v27 = vsel %vm199_vm9, %v333_v25, -inf }
 0x388   :  { %336 = vmax.xlane.f32.xlu1 %v335_v27  ;;  %v1779_v27 = vld [vmem:[%s2056_s8] ss:$0 sm:$0xff] }
 0x38d   :  { %v1454_v28 = vpop.eup %1453 }
 0x38e   :  { %v275_v29 = vmul.f32 %v1454_v28, %v1450_v16 }
 0x390   :  { %1350 = vmatmul.msk.f32.vlgmr.msrb.gmra.mxu2 %vm199_vm9, %v275_v29 }
 0x398   :  { %1355 = vmatmul.msk.f32.vlgmr.msra.gmra.mxu2 %vm174_vm8, %v373_v30  ;;  %v1784_v30 = vld [vmem:[%s2057_s9] ss:$0 sm:$0xff] }
 0x3a1   :  { %346 = vrot.lane.b32.xlu1 %v1703_v1, %s1535_s21 }
 0x3f8   :  { %v234_v36 = vpop.f32.mrf.mxu2 }
 0x3fb   :  { %v337_v31 = vpop.xlane.xlu1 %336 }
 0x3fc   :  { %v338_v32 = vsub.f32 %v333_v25, %v337_v31 }
 0x3fe   :  { %v339_v33 = vmul.f32 1.442695, %v338_v32 }
 0x400   :  { %1455 = vpow2.f32 %v339_v33  ;;  %v599_v33 = vld [vmem:[%s2060_s12 + $0x38] sm:$0xff] }
 0x401   :  { %619 = vmatpush.msrb.mxu2 %v599_v33  ;;  %v1363_v33 = vld [vmem:[%s2081_s26 + $0x20] sm:$0xff] }
 0x406   :  { %v1456_v34 = vpop.eup %1455 }
 0x407   :  { %v341_v35 = vsel %vm199_vm9, %v1456_v34, 0.0 }
 0x408   :  { %342 = vadd.xlane.f32.xlu0 %v341_v35  ;;  %v597_v35 = vld [vmem:[%s2060_s12 + $0x28] sm:$0xff] }
 0x413   :  { %v347_v37 = vpop.permute.xlu1 %346  ;;  %v299_v38 = vpop.f32.mrf.mxu2 }
 0x414   :  { %367 = vmatpush.msrb.mxu3 %v347_v37  ;;  %303 = vrot.lane.b32.xlu1 %v299_v38, %s2071_s22  ;;  %v595_v37 = vld [vmem:[%s2060_s12 + $0x18] sm:$0xff] }
 0x416   :  { %468 = vmatpush.msra.mxu3 %v445_v42  ;;  %v593_v42 = vld [vmem:[%s2060_s12 + $0x8] sm:$0xff] }
 0x418   :  { %469 = vmatpush.msra.mxu3 %v444_v43 }
 0x41a   :  { %470 = vmatpush.msra.mxu3 %v443_v44  ;;  %v592_v44 = vld [vmem:[%s2060_s12] sm:$0xff] }
 0x41b   :  { %v397_v39 = vpop.f32.mrf.mxu2 }
 0x41c   :  { %v398_v40 = vadd.f32 %v397_v39, %v1722_v23  ;;  %471 = vmatpush.msra.mxu3 %v442_v45  ;;  %v1427_v45 = vld [vmem:[%s2059_s11] ss:$0 sm:$0xff] }
 0x41e   :  { %v400_v41 = vsel %vm199_vm9, %v398_v40, -inf }
 0x41f   :  { %401 = vmax.xlane.f32.xlu2 %v400_v41 }
 0x437   :  { %411 = vrot.lane.b32.xlu2 %v1703_v1, %s2073_s1 }
 0x47b   :  { %v343_v46 = vpop.xlane.xlu0 %342 }
 0x47c   :  { %1457 = vrcp.f32 %v343_v46 }
 0x482   :  { %v1458_v47 = vpop.eup %1457 }
 0x483   :  { %v345_v48 = vmul.f32 %v1458_v47, %v1456_v34  ;;  %v598_v34 = vld [vmem:[%s2060_s12 + $0x30] sm:$0xff] }
 0x484   :  { %620 = vmatpush.msrb.mxu2 %v598_v34 }
 0x485   :  { %1353 = vmatmul.msk.f32.vlgmr.msrb.gmra.mxu3 %vm199_vm9, %v345_v48 }
 0x486   :  { %v304_v49 = vpop.permute.xlu1 %303  ;;  %621 = vmatpush.msrb.mxu2 %v597_v35 }
 0x487   :  { %v306_v51 = vsel %vm174_vm8, %v234_v36, %v304_v49  ;;  %v596_v36 = vld [vmem:[%s2060_s12 + $0x20] sm:$0xff] }
 0x488   :  { %622 = vmatpush.msrb.mxu2 %v596_v36 }
 0x48a   :  { %623 = vmatpush.msrb.mxu2 %v595_v37 }
 0x48d   :  { %1357 = vmatmul.msk.f32.vlgmr.msra.gmra.mxu3 %vm70_vm0, %v306_v51 }
 0x492   :  { %v402_v53 = vpop.xlane.xlu2 %401 }
 0x493   :  { %v403_v54 = vsub.f32 %v398_v40, %v402_v53  ;;  %v594_v40 = vld [vmem:[%s2060_s12 + $0x10] sm:$0xff] }
 0x494   :  { %624 = vmatpush.msrb.mxu2 %v594_v40 }
 0x495   :  { %v404_v55 = vmul.f32 1.442695, %v403_v54 }
 0x496   :  { %625 = vmatpush.msrb.mxu2 %v593_v42 }
 0x497   :  { %1459 = vpow2.f32 %v404_v55 }
 0x498   :  { %626 = vmatpush.msrb.mxu2 %v592_v44 }
 0x49a   :  { %v412_v56 = vpop.permute.xlu2 %411 }
 0x49b   :  { %432 = vmatpush.msrb.mxu1 %v412_v56 }
 0x49d   :  { %v1460_v57 = vpop.eup %1459 }
 0x49e   :  { %v406_v58 = vsel %vm199_vm9, %v1460_v57, 0.0 }
 0x49f   :  { %407 = vadd.xlane.f32.xlu1 %v406_v58 }
 0x508   :  { %v369_v59 = vpop.f32.mrf.mxu3 }
 0x510   :  { %v473_v62 = vpop.f32.mrf.mxu3 }
 0x511   :  { %v474_v63 = vadd.f32 %v1424_v60, %v473_v62 }
 0x512   :  { %v408_v0 = vpop.xlane.xlu1 %407 }
 0x513   :  { %1461 = vrcp.f32 %v408_v0  ;;  %v479_v1 = vadd.f32 %v474_v63, %v1678_v50  ;;  %v540_v50 = vld [vmem:[%s2058_s10 + $0x18] sm:$0xff]  ;;  %v1824_v0 = vld [vmem:[%s2061_s13] ss:$0 sm:$0xff] }
 0x514   :  { %563 = vmatpush.msra.mxu0 %v540_v50 }
 0x515   :  { %v483_v2 = vsel %vm70_vm0, %v479_v1, 0.0 }
 0x516   :  { %484 = vadd.xlane.f32.xlu0 %v483_v2  ;;  %564 = vmatpush.msra.mxu0 %v539_v12 }
 0x518   :  { %565 = vmatpush.msra.mxu0 %v538_v13 }
 0x519   :  { %v1462_v3 = vpop.eup %1461 }
 0x51a   :  { %v410_v4 = vmul.f32 %v1462_v3, %v1460_v57  ;;  %566 = vmatpush.msra.mxu0 %v537_v14 }
 0x51c   :  { %1356 = vmatmul.msk.f32.vlgmr.msrb.gmra.mxu1 %vm199_vm9, %v410_v4 }
 0x589   :  { %v485_v5 = vpop.xlane.xlu0 %484 }
 0x58a   :  { %v489_v6 = vmul.f32 %v485_v5, %v1652_v10 }
 0x58c   :  { %v491_v7 = vsub.f32 %v479_v1, %v489_v6 }
 0x58e   :  { %v493_v8 = vmul.f32 %v491_v7, %v491_v7 }
 0x590   :  { %v495_v9 = vsel %vm70_vm0, %v493_v8, 0.0 }
 0x591   :  { %496 = vadd.xlane.f32.xlu2 %v495_v9 }
 0x599   :  { %v434_v11 = vpop.f32.mrf.mxu1 }
 0x59a   :  { %438 = vrot.lane.b32.xlu0 %v434_v11, %s2071_s22 }
 0x604   :  { %v497_v15 = vpop.xlane.xlu2 %496 }
 0x605   :  { %v501_v16 = vmul.f32 %v497_v15, %v1652_v10 }
 0x607   :  { %v503_v17 = vadd.f32 1e-05, %v501_v16 }
 0x609   :  { %1463 = vrsqrt.f32 %v503_v17  ;;  %vm511_vm11 = vweird.f32 %v503_v17 }
 0x60c   :  { %v439_v18 = vpop.permute.xlu0 %438 }
 0x60d   :  { %v441_v19 = vsel %vm174_vm8, %v369_v59, %v439_v18 }
 0x60e   :  { %1358 = vmatmul.msk.f32.gmra.mxu3 %vm70_vm0, %v441_v19 }
 0x60f   :  { %v1464_v20 = vpop.eup %1463 }
 0x610   :  { %v506_v21 = vmul.f32 %v1464_v20, %v503_v17  ;;  %vm512_vm10 = vweird.f32 %v1464_v20 }
 0x611   :  { %vm513_vm12 = vmor %vm511_vm11, %vm512_vm10 }
 0x612   :  { %v507_v22 = vmul.f32 %v1464_v20, %v506_v21 }
 0x614   :  { %v508_v24 = vmul.f32 0.5, %v507_v22 }
 0x616   :  { %v509_v25 = vsub.f32 1.5, %v508_v24 }
 0x618   :  { %v510_v26 = vmul.f32 %v1464_v20, %v509_v25 }
 0x61a   :  { %v514_v28 = vsel %vm513_vm12, %v1464_v20, %v510_v26 }
 0x61b   :  { %v525_v29 = vmul.f32 %v514_v28, %v491_v7 }
 0x61d   :  { %v530_v31 = vmul.f32 %v1779_v27, %v525_v29 }
 0x61f   :  { %v535_v32 = vadd.f32 %v1784_v30, %v530_v31 }
 0x621   :  { %1359 = vmatmul.msk.f32.vlgmr.msra.gmra.mxu0 %vm70_vm0, %v535_v32 }
 0x691   :  { %v476_v38 = vpop.f32.mrf.mxu3 }
 0x692   :  { %v477_v39 = vadd.f32 %v1424_v60, %v476_v38 }
 0x694   :  { %v480_v41 = vadd.f32 %v477_v39, %v1682_v52 }
 0x696   :  { %v486_v43 = vsel %vm70_vm0, %v480_v41, 0.0 }
 0x697   :  { %487 = vadd.xlane.f32.xlu0 %v486_v43 }
 0x69e   :  { %v568_v46 = vpop.f32.mrf.mxu0 }
 0x69f   :  { %v569_v47 = vadd.f32 %v1427_v45, %v568_v46 }
 0x6a1   :  { %v574_v52 = vmul.f32 %v569_v47, %v569_v47 }
 0x6a3   :  { %v576_v48 = vmul.f32 %v574_v52, %v569_v47  ;;  %v1429_v52 = vld [vmem:[%s2062_s14] ss:$0 sm:$0xff] }
 0x6a5   :  { %v578_v49 = vmul.f32 0.044715, %v576_v48 }
 0x6a7   :  { %v580_v51 = vadd.f32 %v578_v49, %v569_v47 }
 0x6a9   :  { %v582_v53 = vmul.f32 0.7978846, %v580_v51  ;;  %v1430_v51 = vld [vmem:[%s2063_s15] ss:$0 sm:$0xff] }
 0x6ab   :  { %1465 = vtanh.f32 %v582_v53 }
 0x6b1   :  { %v1466_v54 = vpop.eup %1465 }
 0x6b2   :  { %v586_v55 = vadd.f32 1.0, %v1466_v54 }
 0x6b4   :  { %v588_v56 = vmul.f32 0.5, %v586_v55 }
 0x6b6   :  { %v590_v57 = vmul.f32 %v588_v56, %v569_v47 }
 0x6b8   :  { %1361 = vmatmul.msk.f32.vlgmr.msrb.gmra.mxu2 %vm604_vm13, %v590_v57 }
 0x70a   :  { %v488_v58 = vpop.xlane.xlu0 %487 }
 0x70b   :  { %v490_v59 = vmul.f32 %v488_v58, %v1652_v10 }
 0x70d   :  { %v492_v60 = vsub.f32 %v480_v41, %v490_v59  ;;  %v1431_v59 = vld [vmem:[%s2053_s5 + $0x1] ss:$0 sm:$0xff]  ;;  %s2085_s5 = smov 48  }
 0x70f   :  { %v494_v62 = vmul.f32 %v492_v60, %v492_v60 }
 0x711   :  { %v498_v63 = vsel %vm70_vm0, %v494_v62, 0.0 }
 0x712   :  { %499 = vadd.xlane.f32.xlu1 %v498_v63 }
 0x73b   :  { %v628_v1 = vpop.f32.mrf.mxu2 }
 0x73c   :  { %v629_v2 = vadd.f32 %v1824_v0, %v628_v1 }
 0x73e   :  { %v634_v3 = vadd.f32 %v629_v2, %v535_v32  ;;  %v1364_v32 = vld [vmem:[%s2081_s26 + $0x28] sm:$0xff] }
 0x740   :  { %v638_v4 = vsel %vm70_vm0, %v634_v3, 0.0 }
 0x741   :  { %639 = vadd.xlane.f32.xlu1 %v638_v4 }
 0x785   :  { %v500_v5 = vpop.xlane.xlu1 %499 }
 0x786   :  { %v502_v6 = vmul.f32 %v500_v5, %v1652_v10 }
 0x788   :  { %v504_v7 = vadd.f32 1e-05, %v502_v6 }
 0x78a   :  { %1467 = vrsqrt.f32 %v504_v7  ;;  %vm521_vm15 = vweird.f32 %v504_v7 }
 0x790   :  { %v1468_v8 = vpop.eup %1467 }
 0x791   :  { %v516_v9 = vmul.f32 %v1468_v8, %v504_v7  ;;  %vm522_vm14 = vweird.f32 %v1468_v8 }
 0x792   :  { %vm523_vm1 = vmor %vm521_vm15, %vm522_vm14 }
 0x793   :  { %v517_v11 = vmul.f32 %v1468_v8, %v516_v9 }
 0x795   :  { %v518_v50 = vmul.f32 0.5, %v517_v11 }
 0x797   :  { %v519_v12 = vsub.f32 1.5, %v518_v50 }
 0x799   :  { %v520_v13 = vmul.f32 %v1468_v8, %v519_v12 }
 0x79b   :  { %v524_v14 = vsel %vm523_vm1, %v1468_v8, %v520_v13 }
 0x79c   :  { %v526_v15 = vmul.f32 %v524_v14, %v492_v60 }
 0x79e   :  { %v531_v16 = vmul.f32 %v1779_v27, %v526_v15  ;;  %v1366_v27 = vld [vmem:[%s2081_s26 + $0x38] sm:$0xff] }
 0x79f   :  { %720 = vmatpush.msra.mxu1 %v1366_v27 }
 0x7a0   :  { %v536_v17 = vadd.f32 %v1784_v30, %v531_v16  ;;  %v1365_v30 = vld [vmem:[%s2081_s26 + $0x30] sm:$0xff] }
 0x7a1   :  { %721 = vmatpush.msra.mxu1 %v1365_v30 }
 0x7a2   :  { %1360 = vmatmul.msk.f32.gmra.mxu0 %vm70_vm0, %v536_v17 }
 0x7a3   :  { %722 = vmatpush.msra.mxu1 %v1364_v32 }
 0x7a5   :  { %723 = vmatpush.msra.mxu1 %v1363_v33 }
 0x7b4   :  { %v640_v18 = vpop.xlane.xlu1 %639 }
 0x7b5   :  { %v644_v19 = vmul.f32 %v640_v18, %v1652_v10 }
 0x7b7   :  { %v646_v20 = vsub.f32 %v634_v3, %v644_v19 }
 0x7b9   :  { %v648_v21 = vmul.f32 %v646_v20, %v646_v20 }
 0x7bb   :  { %v650_v22 = vsel %vm70_vm0, %v648_v21, 0.0 }
 0x7bc   :  { %651 = vadd.xlane.f32.xlu1 %v650_v22 }
 0x81f   :  { %v571_v24 = vpop.f32.mrf.mxu0 }
 0x820   :  { %v572_v25 = vadd.f32 %v1427_v45, %v571_v24 }
 0x822   :  { %v575_v26 = vmul.f32 %v572_v25, %v572_v25 }
 0x824   :  { %v577_v28 = vmul.f32 %v575_v26, %v572_v25 }
 0x826   :  { %v579_v29 = vmul.f32 0.044715, %v577_v28 }
 0x828   :  { %v581_v31 = vadd.f32 %v579_v29, %v572_v25 }
 0x82a   :  { %v583_v34 = vmul.f32 0.7978846, %v581_v31 }
 0x82c   :  { %1469 = vtanh.f32 %v583_v34 }
 0x82f   :  { %v652_v35 = vpop.xlane.xlu1 %651 }
 0x830   :  { %v656_v36 = vmul.f32 %v652_v35, %v1652_v10 }
 0x832   :  { %v1470_v37 = vpop.eup %1469  ;;  %v658_v38 = vadd.f32 1e-05, %v656_v36 }
 0x833   :  { %v587_v39 = vadd.f32 1.0, %v1470_v37 }
 0x834   :  { %1471 = vrsqrt.f32 %v658_v38  ;;  %vm666_vm3 = vweird.f32 %v658_v38 }
 0x835   :  { %v589_v40 = vmul.f32 0.5, %v587_v39 }
 0x837   :  { %v591_v41 = vmul.f32 %v589_v40, %v572_v25 }
 0x839   :  { %1362 = vmatmul.msk.f32.gmra.mxu2 %vm604_vm13, %v591_v41 }
 0x83a   :  { %v1472_v42 = vpop.eup %1471 }
 0x83b   :  { %v661_v43 = vmul.f32 %v1472_v42, %v658_v38  ;;  %vm667_vm2 = vweird.f32 %v1472_v42 }
 0x83c   :  { %vm668_vm4 = vmor %vm666_vm3, %vm667_vm2 }
 0x83d   :  { %v662_v44 = vmul.f32 %v1472_v42, %v661_v43 }
 0x83f   :  { %v663_v45 = vmul.f32 0.5, %v662_v44 }
 0x841   :  { %v664_v46 = vsub.f32 1.5, %v663_v45 }
 0x843   :  { %v665_v47 = vmul.f32 %v1472_v42, %v664_v46 }
 0x845   :  { %v669_v48 = vsel %vm668_vm4, %v1472_v42, %v665_v47 }
 0x846   :  { %v680_v49 = vmul.f32 %v669_v48, %v646_v20 }
 0x848   :  { %v685_v53 = vmul.f32 %v1429_v52, %v680_v49 }
 0x84a   :  { %v1854_v54 = vadd.f32 %v1430_v51, %v685_v53 }
 0x84c   :  { %1368 = vmatmul.msk.f32.vlgmr.msra.gmra.mxu1 %vm70_vm0, %v1854_v54 }
 0x8bc   :  { %v631_v55 = vpop.f32.mrf.mxu2 }
 0x8bd   :  { %v632_v56 = vadd.f32 %v1824_v0, %v631_v55 }
 0x8bf   :  { %v635_v57 = vadd.f32 %v632_v56, %v536_v17 }
 0x8c1   :  { %v641_v58 = vsel %vm70_vm0, %v635_v57, 0.0 }
 0x8c2   :  { %642 = vadd.xlane.f32.xlu1 %v641_v58 }
 0x8c9   :  { %v725_v60 = vpop.f32.mrf.mxu1 }
 0x8ca   :  { %v1863_v62 = vadd.f32 %v1431_v59, %v725_v60 }
 0x8cc   :  { %732 = vrot.lane.b32.xlu2 %v1863_v62, %s1533_s28 }
 0x926   :  { %v733_v63 = vpop.permute.xlu2 %732 }
 0x927   :  { %1370 = vmatpush.xpose.msk.msrb.mxu3 %vm174_vm8, %v733_v63 }
 0x92a   :  { %1371 = vmatmul.msk.f32.vlgmr.msrb.gmra.mxu3 %vm174_vm8, %v1863_v62 }
 0x935   :  { %v643_v0 = vpop.xlane.xlu1 %642 }
 0x936   :  { %v645_v1 = vmul.f32 %v643_v0, %v1652_v10 }
 0x938   :  { %v647_v2 = vsub.f32 %v635_v57, %v645_v1 }
 0x93a   :  { %v649_v3 = vmul.f32 %v647_v2, %v647_v2 }
 0x93c   :  { %v653_v4 = vsel %vm70_vm0, %v649_v3, 0.0 }
 0x93d   :  { %654 = vadd.xlane.f32.xlu1 %v653_v4 }
 0x956   :  { %797 = vrot.lane.b32.xlu1 %v1863_v62, %s1534_s4 }
 0x95e   :  { %769 = vrot.lane.b32.xlu1 %v1863_v62, %s1535_s21 }
 0x9ad   :  { %v755_v5 = vpop.f32.mrf.mxu3 }
 0x9ae   :  { %v756_v6 = vadd.f32 %v755_v5, %v1699_v61 }
 0x9b0   :  { %v655_v7 = vpop.xlane.xlu1 %654  ;;  %v758_v8 = vsel %vm199_vm9, %v756_v6, -inf }
 0x9b1   :  { %v657_v9 = vmul.f32 %v655_v7, %v1652_v10  ;;  %759 = vmax.xlane.f32.xlu0 %v758_v8  ;;  %v1385_v8 = vld [vmem:[%s2054_s6 + $0x38] sm:$0xff] }
 0x9b3   :  { %v659_v11 = vadd.f32 1e-05, %v657_v9  ;;  %v1384_v9 = vld [vmem:[%s2054_s6 + $0x30] sm:$0xff] }
 0x9b5   :  { %1473 = vrsqrt.f32 %v659_v11  ;;  %vm676_vm6 = vweird.f32 %v659_v11 }
 0x9bb   :  { %v1474_v50 = vpop.eup %1473 }
 0x9bc   :  { %v671_v12 = vmul.f32 %v1474_v50, %v659_v11  ;;  %vm677_vm5 = vweird.f32 %v1474_v50  ;;  %v1383_v11 = vld [vmem:[%s2054_s6 + $0x28] sm:$0xff] }
 0x9bd   :  { %vm678_vm7 = vmor %vm676_vm6, %vm677_vm5  ;;  %vm1261_vm5 = vcmask 1040384  }
 0x9be   :  { %v672_v13 = vmul.f32 %v1474_v50, %v671_v12 }
 0x9c0   :  { %v673_v14 = vmul.f32 0.5, %v672_v13 }
 0x9c2   :  { %v674_v15 = vsub.f32 1.5, %v673_v14 }
 0x9c4   :  { %v675_v16 = vmul.f32 %v1474_v50, %v674_v15 }
 0x9c5   :  { %795 = vrot.lane.b32.xlu0 %v1863_v62, %s1532_s27 }
 0x9c6   :  { %v679_v17 = vsel %vm678_vm7, %v1474_v50, %v675_v16  ;;  %v1382_v16 = vld [vmem:[%s2054_s6 + $0x20] sm:$0xff] }
 0x9c7   :  { %v681_v18 = vmul.f32 %v679_v17, %v647_v2 }
 0x9c8   :  { %v798_v19 = vpop.permute.xlu1 %797 }
 0x9c9   :  { %1373 = vmatpush.xpose.msk.msrb.mxu1 %vm174_vm8, %v798_v19  ;;  %v686_v20 = vmul.f32 %v1429_v52, %v681_v18 }
 0x9cb   :  { %v1882_v21 = vadd.f32 %v1430_v51, %v686_v20 }
 0x9cd   :  { %1369 = vmatmul.msk.f32.gmra.mxu1 %vm70_vm0, %v1882_v21 }
 0x9d0   :  { %v770_v22 = vpop.permute.xlu1 %769 }
 0x9d1   :  { %790 = vmatpush.msrb.mxu0 %v770_v22 }
 0xa24   :  { %v760_v24 = vpop.xlane.xlu0 %759 }
 0xa25   :  { %v761_v25 = vsub.f32 %v756_v6, %v760_v24 }
 0xa27   :  { %v762_v26 = vmul.f32 1.442695, %v761_v25  ;;  %v1432_v25 = vld [vmem:[%s2055_s7 + $0x1] ss:$0 sm:$0xff] }
 0xa29   :  { %1475 = vpow2.f32 %v762_v26 }
 0xa2f   :  { %v1476_v28 = vpop.eup %1475 }
 0xa30   :  { %v764_v27 = vsel %vm199_vm9, %v1476_v28, 0.0 }
 0xa31   :  { %765 = vadd.xlane.f32.xlu0 %v764_v27 }
 0xa37   :  { %v796_v29 = vpop.permute.xlu0 %795 }
 0xa38   :  { %1374 = vmatmul.msk.f32.vlgmr.msrb.gmra.mxu1 %vm174_vm8, %v796_v29 }
 0xa4a   :  { %v728_v30 = vpop.f32.mrf.mxu1 }
 0xa4b   :  { %v729_v31 = vadd.f32 %v1431_v59, %v728_v30 }
 0xa4d   :  { %931 = vrot.lane.b32.xlu2 %v729_v31, %s1534_s4 }
 0xa55   :  { %929 = vrot.lane.b32.xlu2 %v729_v31, %s1532_s27 }
 0xa5d   :  { %866 = vrot.lane.b32.xlu2 %v729_v31, %s1533_s28  ;;  %s1538_s28 = smov [#allocation2]  }
 0xaa4   :  { %v766_v32 = vpop.xlane.xlu0 %765 }
 0xaa5   :  { %1477 = vrcp.f32 %v766_v32 }
 0xaa7   :  { %v932_v33 = vpop.permute.xlu2 %931 }
 0xaa8   :  { %1379 = vmatpush.xpose.msk.msra.mxu1 %vm174_vm8, %v932_v33 }
 0xaab   :  { %v1478_v34 = vpop.eup %1477 }
 0xaac   :  { %v768_v35 = vmul.f32 %v1478_v34, %v1476_v28 }
 0xaae   :  { %1372 = vmatmul.msk.f32.vlgmr.msrb.gmra.mxu0 %vm199_vm9, %v768_v35 }
 0xaaf   :  { %v930_v36 = vpop.permute.xlu2 %929 }
 0xab0   :  { %1380 = vmatmul.msk.f32.vlgmr.msra.gmra.mxu1 %vm174_vm8, %v930_v36 }
 0xab5   :  { %v820_v37 = vpop.f32.mrf.mxu1 }
 0xab6   :  { %v821_v38 = vadd.f32 %v820_v37, %v1699_v61 }
 0xab7   :  { %v867_v39 = vpop.permute.xlu2 %866 }
 0xab8   :  { %1376 = vmatpush.xpose.msk.msra.mxu0 %vm174_vm8, %v867_v39  ;;  %v823_v40 = vsel %vm199_vm9, %v821_v38, -inf }
 0xab9   :  { %824 = vmax.xlane.f32.xlu1 %v823_v40 }
 0xabb   :  { %1377 = vmatmul.msk.f32.vlgmr.msra.gmra.mxu0 %vm174_vm8, %v729_v31 }
 0xabc   :  { %1027 = vmatpush.msrb.mxu0 %v1385_v8 }
 0xabe   :  { %1028 = vmatpush.msrb.mxu0 %v1384_v9 }
 0xac0   :  { %1029 = vmatpush.msrb.mxu0 %v1383_v11 }
 0xac2   :  { %1030 = vmatpush.msrb.mxu0 %v1382_v16  ;;  %v1400_v16 = vld [vmem:[%s2060_s12 + $0x50] sm:$0xff] }
 0xb2b   :  { %v792_v47 = vpop.f32.mrf.mxu0 }
 0xb2c   :  { %v825_v41 = vpop.xlane.xlu1 %824 }
 0xb2d   :  { %v826_v42 = vsub.f32 %v821_v38, %v825_v41  ;;  %v954_v43 = vpop.f32.mrf.mxu1 }
 0xb2e   :  { %v955_v44 = vadd.f32 %v954_v43, %v1722_v23  ;;  %v1393_v43 = vld [vmem:[%s2058_s10 + $0x30] sm:$0xff] }
 0xb2f   :  { %v827_v45 = vmul.f32 1.442695, %v826_v42 }
 0xb30   :  { %v957_v46 = vsel %vm199_vm9, %v955_v44, -inf }
 0xb31   :  { %1479 = vpow2.f32 %v827_v45  ;;  %958 = vmax.xlane.f32.xlu2 %v957_v46  ;;  %v1391_v45 = vld [vmem:[%s2058_s10 + $0x20] sm:$0xff] }
 0xb37   :  { %v1480_v61 = vpop.eup %1479 }
 0xb38   :  { %v829_v52 = vsel %vm199_vm9, %v1480_v61, 0.0  ;;  %v889_v48 = vpop.f32.mrf.mxu0 }
 0xb39   :  { %830 = vadd.xlane.f32.xlu0 %v829_v52  ;;  %v890_v49 = vadd.f32 %v889_v48, %v1722_v23 }
 0xb3b   :  { %v892_v51 = vsel %vm199_vm9, %v890_v49, -inf }
 0xb41   :  { %893 = vmax.xlane.f32.xlu0 %v892_v51 }
 0xb49   :  { %834 = vrot.lane.b32.xlu2 %v1863_v62, %s2085_s5 }
 0xb55   :  { %968 = vrot.lane.b32.xlu0 %v729_v31, %s2085_s5 }
 0xba4   :  { %v959_v53 = vpop.xlane.xlu2 %958 }
 0xba5   :  { %v960_v55 = vsub.f32 %v955_v44, %v959_v53  ;;  %v1392_v44 = vld [vmem:[%s2058_s10 + $0x28] sm:$0xff] }
 0xba7   :  { %v961_v56 = vmul.f32 1.442695, %v960_v55 }
 0xba9   :  { %1481 = vpow2.f32 %v961_v56  ;;  %v1433_v56 = vld [vmem:[%s2056_s8 + $0x1] ss:$0 sm:$0xff] }
 0xbac   :  { %v835_v57 = vpop.permute.xlu2 %834  ;;  %v831_v58 = vpop.xlane.xlu0 %830 }
 0xbad   :  { %1483 = vrcp.f32 %v831_v58  ;;  %855 = vmatpush.msra.mxu3 %v835_v57 }
 0xbaf   :  { %v1482_v59 = vpop.eup %1481 }
 0xbb0   :  { %v963_v60 = vsel %vm199_vm9, %v1482_v59, 0.0 }
 0xbb1   :  { %964 = vadd.xlane.f32.xlu1 %v963_v60 }
 0xbb3   :  { %v1484_v23 = vpop.eup %1483 }
 0xbb4   :  { %v833_v63 = vmul.f32 %v1484_v23, %v1480_v61  ;;  %v894_v0 = vpop.xlane.xlu0 %893 }
 0xbb5   :  { %v895_v1 = vsub.f32 %v890_v49, %v894_v0 }
 0xbb6   :  { %1375 = vmatmul.msk.f32.vlgmr.msra.gmra.mxu3 %vm199_vm9, %v833_v63 }
 0xbb7   :  { %v896_v62 = vmul.f32 1.442695, %v895_v1 }
 0xbb9   :  { %1485 = vpow2.f32 %v896_v62 }
 0xbbf   :  { %v1486_v2 = vpop.eup %1485 }
 0xbc0   :  { %v898_v3 = vsel %vm199_vm9, %v1486_v2, 0.0 }
 0xbc1   :  { %899 = vadd.xlane.f32.xlu1 %v898_v3 }
 0xbc7   :  { %v969_v4 = vpop.permute.xlu0 %968 }
 0xbc8   :  { %989 = vmatpush.msrb.mxu3 %v969_v4 }
 0xbda   :  { %903 = vrot.lane.b32.xlu1 %v729_v31, %s1535_s21  ;;  %s2086_s21 = smov 16  }
 0xc24   :  { %v965_v5 = vpop.xlane.xlu1 %964 }
 0xc25   :  { %1487 = vrcp.f32 %v965_v5 }
 0xc2b   :  { %v1488_v6 = vpop.eup %1487 }
 0xc2c   :  { %v967_v7 = vmul.f32 %v1488_v6, %v1482_v59  ;;  %v1434_v59 = vld [vmem:[%s2057_s9 + $0x1] ss:$0 sm:$0xff] }
 0xc2e   :  { %1381 = vmatmul.msk.f32.vlgmr.msrb.gmra.mxu3 %vm199_vm9, %v967_v7 }
 0xc34   :  { %v900_v12 = vpop.xlane.xlu1 %899 }
 0xc35   :  { %1489 = vrcp.f32 %v900_v12  ;;  %v1404_v12 = vld [vmem:[%s2060_s12 + $0x70] sm:$0xff] }
 0xc39   :  { %v857_v50 = vpop.f32.mrf.mxu3 }
 0xc3a   :  { %861 = vrot.lane.b32.xlu0 %v857_v50, %s2086_s21  ;;  %v1405_v50 = vld [vmem:[%s2060_s12 + $0x78] sm:$0xff] }
 0xc3b   :  { %v1490_v13 = vpop.eup %1489  ;;  %1183 = vmatpush.msrb.mxu1 %v1405_v50 }
 0xc3c   :  { %v902_v14 = vmul.f32 %v1490_v13, %v1486_v2  ;;  %v1403_v13 = vld [vmem:[%s2060_s12 + $0x68] sm:$0xff] }
 0xc3d   :  { %1184 = vmatpush.msrb.mxu1 %v1404_v12 }
 0xc3f   :  { %1185 = vmatpush.msrb.mxu1 %v1403_v13 }
 0xc4c   :  { %v904_v15 = vpop.permute.xlu1 %903 }
 0xc4d   :  { %924 = vmatpush.msra.mxu2 %v904_v15  ;;  %v1401_v15 = vld [vmem:[%s2060_s12 + $0x58] sm:$0xff] }
 0xc4e   :  { %1378 = vmatmul.msk.f32.vlgmr.msra.gmra.mxu2 %vm199_vm9, %v902_v14  ;;  %v1402_v14 = vld [vmem:[%s2060_s12 + $0x60] sm:$0xff] }
 0xc4f   :  { %1186 = vmatpush.msrb.mxu1 %v1402_v14 }
 0xc51   :  { %1187 = vmatpush.msrb.mxu1 %v1401_v15 }
 0xc53   :  { %1188 = vmatpush.msrb.mxu1 %v1400_v16 }
 0xcac   :  { %v862_v17 = vpop.permute.xlu0 %861 }
 0xcad   :  { %v864_v18 = vsel %vm174_vm8, %v792_v47, %v862_v17  ;;  %v1399_v17 = vld [vmem:[%s2060_s12 + $0x48] sm:$0xff] }
 0xcae   :  { %1387 = vmatmul.msk.f32.vlgmr.msrb.gmra.mxu0 %vm70_vm0, %v864_v18  ;;  %1189 = vmatpush.msrb.mxu1 %v1399_v17  ;;  %v1398_v18 = vld [vmem:[%s2060_s12 + $0x40] sm:$0xff] }
 0xcb0   :  { %1190 = vmatpush.msrb.mxu1 %v1398_v18 }
 0xcb1   :  { %v991_v19 = vpop.f32.mrf.mxu3 }
 0xcb2   :  { %995 = vrot.lane.b32.xlu2 %v991_v19, %s2086_s21  ;;  %v1435_v19 = vld [vmem:[%s2059_s11 + $0x1] ss:$0 sm:$0xff]  ;;  %s1332_s11 = sshll.u32 %s1538_s28, 4  ;;  %s1333_s11 = int_to_ptr.vmem [resolvable:$true] %s1332_s11 }
 0xcd1   :  { %v926_v20 = vpop.f32.mrf.mxu2 }
 0xd0c   :  { %v996_v22 = vpop.permute.xlu2 %995 }
 0xd0d   :  { %v998_v24 = vsel %vm174_vm8, %v926_v20, %v996_v22 }
 0xd0e   :  { %1388 = vmatmul.msk.f32.gmra.mxu0 %vm70_vm0, %v998_v24 }
 0xd2b   :  { %v1032_v26 = vpop.f32.mrf.mxu0 }
 0xd2c   :  { %v1033_v28 = vadd.f32 %v1432_v25, %v1032_v26 }
 0xd2e   :  { %v1038_v27 = vadd.f32 %v1033_v28, %v1854_v54 }
 0xd30   :  { %v1044_v29 = vsel %vm70_vm0, %v1038_v27, 0.0 }
 0xd31   :  { %1045 = vadd.xlane.f32.xlu0 %v1044_v29 }
 0xd8b   :  { %v1035_v30 = vpop.f32.mrf.mxu0 }
 0xd8c   :  { %v1036_v31 = vadd.f32 %v1432_v25, %v1035_v30 }
 0xd8e   :  { %v1039_v32 = vadd.f32 %v1036_v31, %v1882_v21  ;;  %v1394_v21 = vld [vmem:[%s2058_s10 + $0x38] sm:$0xff] }
 0xd8f   :  { %1126 = vmatpush.msrb.mxu2 %v1394_v21  ;;  %v1436_v21 = vld [vmem:[%s2061_s13 + $0x1] ss:$0 sm:$0xff]  ;;  %s1334_s13 = sshll.u32 %s2068_s20, 4  ;;  %s1335_s13 = int_to_ptr.hbm [resolvable:$true] %s1334_s13 }
 0xd90   :  { %v1047_v33 = vsel %vm70_vm0, %v1039_v32, 0.0 }
 0xd91   :  { %1048 = vadd.xlane.f32.xlu2 %v1047_v33  ;;  %1127 = vmatpush.msrb.mxu2 %v1393_v43 }
 0xd93   :  { %1128 = vmatpush.msrb.mxu2 %v1392_v44 }
 0xd95   :  { %1129 = vmatpush.msrb.mxu2 %v1391_v45 }
 0xda4   :  { %v1046_v34 = vpop.xlane.xlu0 %1045 }
 0xda5   :  { %v1050_v35 = vmul.f32 %v1046_v34, %v1652_v10 }
 0xda7   :  { %v1052_v36 = vsub.f32 %v1038_v27, %v1050_v35 }
 0xda9   :  { %v1054_v37 = vmul.f32 %v1052_v36, %v1052_v36 }
 0xdab   :  { %v1056_v38 = vsel %vm70_vm0, %v1054_v37, 0.0 }
 0xdac   :  { %1057 = vadd.xlane.f32.xlu1 %v1056_v38 }
 0xe04   :  { %v1049_v39 = vpop.xlane.xlu2 %1048 }
 0xe05   :  { %v1051_v54 = vmul.f32 %v1049_v39, %v1652_v10 }
 0xe07   :  { %v1053_v40 = vsub.f32 %v1039_v32, %v1051_v54 }
 0xe09   :  { %v1055_v41 = vmul.f32 %v1053_v40, %v1053_v40 }
 0xe0b   :  { %v1059_v42 = vsel %vm70_vm0, %v1055_v41, 0.0 }
 0xe0c   :  { %1060 = vadd.xlane.f32.xlu2 %v1059_v42 }
 0xe1f   :  { %v1058_v46 = vpop.xlane.xlu1 %1057 }
 0xe20   :  { %v1062_v47 = vmul.f32 %v1058_v46, %v1652_v10 }
 0xe22   :  { %v1064_v61 = vadd.f32 1e-05, %v1062_v47 }
 0xe24   :  { %1491 = vrsqrt.f32 %v1064_v61  ;;  %vm1072_vm9 = vweird.f32 %v1064_v61 }
 0xe2a   :  { %v1492_v52 = vpop.eup %1491 }
 0xe2b   :  { %v1067_v48 = vmul.f32 %v1492_v52, %v1064_v61  ;;  %vm1073_vm8 = vweird.f32 %v1492_v52 }
 0xe2c   :  { %vm1074_vm10 = vmor %vm1072_vm9, %vm1073_vm8 }
 0xe2d   :  { %v1068_v49 = vmul.f32 %v1492_v52, %v1067_v48 }
 0xe2f   :  { %v1069_v51 = vmul.f32 0.5, %v1068_v49 }
 0xe31   :  { %v1070_v53 = vsub.f32 1.5, %v1069_v51 }
 0xe33   :  { %v1071_v55 = vmul.f32 %v1492_v52, %v1070_v53 }
 0xe35   :  { %v1075_v57 = vsel %vm1074_vm10, %v1492_v52, %v1071_v55 }
 0xe36   :  { %v1086_v58 = vmul.f32 %v1075_v57, %v1052_v36 }
 0xe38   :  { %v1091_v60 = vmul.f32 %v1433_v56, %v1086_v58 }
 0xe3a   :  { %v1960_v23 = vadd.f32 %v1434_v59, %v1091_v60 }
 0xe3c   :  { %1396 = vmatmul.msk.f32.vlgmr.msrb.gmra.mxu2 %vm70_vm0, %v1960_v23 }
 0xe7f   :  { %v1061_v63 = vpop.xlane.xlu2 %1060 }
 0xe80   :  { %v1063_v0 = vmul.f32 %v1061_v63, %v1652_v10 }
 0xe82   :  { %v1065_v1 = vadd.f32 1e-05, %v1063_v0 }
 0xe84   :  { %1493 = vrsqrt.f32 %v1065_v1  ;;  %vm1082_vm12 = vweird.f32 %v1065_v1 }
 0xe8a   :  { %v1494_v62 = vpop.eup %1493 }
 0xe8b   :  { %v1077_v2 = vmul.f32 %v1494_v62, %v1065_v1  ;;  %vm1083_vm11 = vweird.f32 %v1494_v62 }
 0xe8c   :  { %vm1084_vm14 = vmor %vm1082_vm12, %vm1083_vm11 }
 0xe8d   :  { %v1078_v3 = vmul.f32 %v1494_v62, %v1077_v2  ;;  %v1265_v2 = vld [vmem:[%s2064_s16 + $0x10] sm:$0xff] }
 0xe8f   :  { %v1079_v4 = vmul.f32 0.5, %v1078_v3  ;;  %v1264_v3 = vld [vmem:[%s2064_s16 + $0x8] sm:$0xff] }
 0xe91   :  { %v1080_v5 = vsub.f32 1.5, %v1079_v4 }
 0xe93   :  { %v1081_v6 = vmul.f32 %v1494_v62, %v1080_v5  ;;  %v1263_v5 = vld [vmem:[%s2064_s16] sm:$0xff] }
 0xe95   :  { %v1085_v7 = vsel %vm1084_vm14, %v1494_v62, %v1081_v6  ;;  %v1266_v62 = vld [vmem:[%s2064_s16 + $0x18] sm:$0xff] }
 0xe96   :  { %v1087_v8 = vmul.f32 %v1085_v7, %v1053_v40  ;;  %1286 = vmatpush.msra.mxu3 %v1266_v62 }
 0xe98   :  { %v1092_v9 = vmul.f32 %v1433_v56, %v1087_v8  ;;  %1287 = vmatpush.msra.mxu3 %v1265_v2 }
 0xe9a   :  { %v1097_v11 = vadd.f32 %v1434_v59, %v1092_v9  ;;  %1288 = vmatpush.msra.mxu3 %v1264_v3 }
 0xe9c   :  { %1397 = vmatmul.msk.f32.gmra.mxu2 %vm70_vm0, %v1097_v11  ;;  %1289 = vmatpush.msra.mxu3 %v1263_v5 }
 0xebf   :  { %v1131_v20 = vpop.f32.mrf.mxu2 }
 0xec0   :  { %v1132_v22 = vadd.f32 %v1435_v19, %v1131_v20 }
 0xec2   :  { %v1137_v24 = vmul.f32 %v1132_v22, %v1132_v22 }
 0xec4   :  { %v1139_v25 = vmul.f32 %v1137_v24, %v1132_v22 }
 0xec6   :  { %v1141_v26 = vmul.f32 0.044715, %v1139_v25 }
 0xec8   :  { %v1143_v28 = vadd.f32 %v1141_v26, %v1132_v22 }
 0xeca   :  { %v1145_v27 = vmul.f32 0.7978846, %v1143_v28 }
 0xecc   :  { %1495 = vtanh.f32 %v1145_v27  ;;  %v1438_v27 = vld [vmem:[%s2063_s15 + $0x1] ss:$0 sm:$0xff] }
 0xed2   :  { %v1496_v29 = vpop.eup %1495 }
 0xed3   :  { %v1149_v30 = vadd.f32 1.0, %v1496_v29 }
 0xed5   :  { %v1151_v31 = vmul.f32 0.5, %v1149_v30 }
 0xed7   :  { %v1153_v32 = vmul.f32 %v1151_v31, %v1132_v22 }
 0xed9   :  { %1407 = vmatmul.msk.f32.vlgmr.msrb.gmra.mxu1 %vm604_vm13, %v1153_v32 }
 0xf1f   :  { %v1134_v33 = vpop.f32.mrf.mxu2 }
 0xf20   :  { %v1135_v34 = vadd.f32 %v1435_v19, %v1134_v33  ;;  %v1298_v33 = vld [vmem:[%s2066_s18 + $0x18] sm:$0xff] }
 0xf21   :  { %1318 = vmatpush.msrb.mxu3 %v1298_v33 }
 0xf22   :  { %v1138_v35 = vmul.f32 %v1135_v34, %v1135_v34 }
 0xf24   :  { %v1140_v36 = vmul.f32 %v1138_v35, %v1135_v34  ;;  %v1296_v35 = vld [vmem:[%s2066_s18 + $0x8] sm:$0xff] }
 0xf26   :  { %v1142_v37 = vmul.f32 0.044715, %v1140_v36  ;;  %v1295_v36 = vld [vmem:[%s2066_s18] sm:$0xff] }
 0xf28   :  { %v1144_v38 = vadd.f32 %v1142_v37, %v1135_v34  ;;  %v1439_v37 = vld [vmem:[%s2065_s17] ss:$0 sm:$0xff] }
 0xf2a   :  { %v1146_v39 = vmul.f32 0.7978846, %v1144_v38 }
 0xf2c   :  { %1497 = vtanh.f32 %v1146_v39 }
 0xf32   :  { %v1498_v54 = vpop.eup %1497 }
 0xf33   :  { %v1150_v40 = vadd.f32 1.0, %v1498_v54 }
 0xf35   :  { %v1152_v41 = vmul.f32 0.5, %v1150_v40  ;;  %v1440_v40 = vld [vmem:[%s2067_s19] ss:$0 sm:$0xff] }
 0xf37   :  { %v1154_v42 = vmul.f32 %v1152_v41, %v1135_v34  ;;  %v1297_v34 = vld [vmem:[%s2066_s18 + $0x10] sm:$0xff] }
 0xf38   :  { %1319 = vmatpush.msrb.mxu3 %v1297_v34 }
 0xf39   :  { %1408 = vmatmul.msk.f32.gmra.mxu1 %vm604_vm13, %v1154_v42 }
 0xf3a   :  { %1320 = vmatpush.msrb.mxu3 %v1296_v35 }
 0xf3c   :  { %1321 = vmatpush.msrb.mxu3 %v1295_v36 }
 0xf56   :  { %v1192_v43 = vpop.f32.mrf.mxu1 }
 0xf57   :  { %v1193_v44 = vadd.f32 %v1436_v21, %v1192_v43 }
 0xf59   :  { %v1198_v45 = vadd.f32 %v1193_v44, %v1960_v23 }
 0xf5b   :  { %v1204_v46 = vsel %vm70_vm0, %v1198_v45, 0.0 }
 0xf5c   :  { %1205 = vadd.xlane.f32.xlu1 %v1204_v46 }
 0xfb6   :  { %v1195_v47 = vpop.f32.mrf.mxu1 }
 0xfb7   :  { %v1196_v61 = vadd.f32 %v1436_v21, %v1195_v47 }
 0xfb9   :  { %v1199_v52 = vadd.f32 %v1196_v61, %v1097_v11 }
 0xfbb   :  { %v1207_v48 = vsel %vm70_vm0, %v1199_v52, 0.0 }
 0xfbc   :  { %1208 = vadd.xlane.f32.xlu0 %v1207_v48 }
 0xfcf   :  { %v1206_v49 = vpop.xlane.xlu1 %1205 }
 0xfd0   :  { %v1210_v51 = vmul.f32 %v1206_v49, %v1652_v10 }
 0xfd2   :  { %v1212_v53 = vsub.f32 %v1198_v45, %v1210_v51 }
 0xfd4   :  { %v1214_v55 = vmul.f32 %v1212_v53, %v1212_v53 }
 0xfd6   :  { %v1216_v56 = vsel %vm70_vm0, %v1214_v55, 0.0 }
 0xfd7   :  { %1217 = vadd.xlane.f32.xlu0 %v1216_v56 }
0x102f   :  { %v1209_v57 = vpop.xlane.xlu0 %1208 }
0x1030   :  { %v1211_v58 = vmul.f32 %v1209_v57, %v1652_v10 }
0x1032   :  { %v1213_v59 = vsub.f32 %v1199_v52, %v1211_v58 }
0x1034   :  { %v1215_v60 = vmul.f32 %v1213_v59, %v1213_v59 }
0x1036   :  { %v1219_v23 = vsel %vm70_vm0, %v1215_v60, 0.0 }
0x1037   :  { %1220 = vadd.xlane.f32.xlu2 %v1219_v23 }
0x104a   :  { %v1218_v63 = vpop.xlane.xlu0 %1217 }
0x104b   :  { %v1222_v0 = vmul.f32 %v1218_v63, %v1652_v10 }
0x104d   :  { %v1224_v1 = vadd.f32 1e-05, %v1222_v0 }
0x104f   :  { %1499 = vrsqrt.f32 %v1224_v1  ;;  %vm1232_vm15 = vweird.f32 %v1224_v1 }
0x1055   :  { %v1500_v4 = vpop.eup %1499 }
0x1056   :  { %v1227_v6 = vmul.f32 %v1500_v4, %v1224_v1  ;;  %vm1233_vm13 = vweird.f32 %v1500_v4 }
0x1057   :  { %vm1234_vm1 = vmor %vm1232_vm15, %vm1233_vm13 }
0x1058   :  { %v1228_v9 = vmul.f32 %v1500_v4, %v1227_v6 }
0x105a   :  { %v1229_v50 = vmul.f32 0.5, %v1228_v9 }
0x105c   :  { %v1230_v12 = vsub.f32 1.5, %v1229_v50 }
0x105e   :  { %v1231_v15 = vmul.f32 %v1500_v4, %v1230_v12 }
0x1060   :  { %v1235_v18 = vsel %vm1234_vm1, %v1500_v4, %v1231_v15 }
0x1061   :  { %v1246_v22 = vmul.f32 %v1235_v18, %v1212_v53 }
0x10aa   :  { %v1221_v7 = vpop.xlane.xlu2 %1220 }
0x10ab   :  { %v1223_v8 = vmul.f32 %v1221_v7, %v1652_v10  ;;  %v1437_v10 = vld [vmem:[%s2062_s14 + $0x1] ss:$0 sm:$0xff] }
0x10ac   :  { %v1251_v26 = vmul.f32 %v1437_v10, %v1246_v22 }
0x10ad   :  { %v1225_v11 = vadd.f32 1e-05, %v1223_v8 }
0x10ae   :  { %v1256_v30 = vadd.f32 %v1438_v27, %v1251_v26 }
0x10af   :  { %1501 = vrsqrt.f32 %v1225_v11  ;;  %vm1242_vm3 = vweird.f32 %v1225_v11 }
0x10b5   :  { %v1502_v13 = vpop.eup %1501 }
0x10b6   :  { %v1237_v14 = vmul.f32 %v1502_v13, %v1225_v11  ;;  %vm1243_vm2 = vweird.f32 %v1502_v13 }
0x10b7   :  { %vm1244_vm4 = vmor %vm1242_vm3, %vm1243_vm2 }
0x10b8   :  { %v1238_v16 = vmul.f32 %v1502_v13, %v1237_v14 }
0x10ba   :  { %v1239_v17 = vmul.f32 0.5, %v1238_v16 }
0x10bc   :  { %v1240_v19 = vsub.f32 1.5, %v1239_v17 }
0x10be   :  { %v1241_v20 = vmul.f32 %v1502_v13, %v1240_v19 }
0x10c0   :  { %v1245_v24 = vsel %vm1244_vm4, %v1502_v13, %v1241_v20 }
0x10c1   :  { %v1247_v25 = vmul.f32 %v1245_v24, %v1213_v59 }
0x10c3   :  { %v1252_v28 = vmul.f32 %v1437_v10, %v1247_v25 }
0x10c5   :  { %v1257_v29 = vadd.f32 %v1438_v27, %v1252_v28 }
0x10c7   :  { %v1259_v31 = vrot.slane %v1257_v29, 7 }
0x10c9   :  { %v1262_v32 = vsel %vm1261_vm5, %v1256_v30, %v1259_v31 }
0x10ca   :  { %1411 = vmatmul.msk.f32.vlgmr.msra.gmra.mxu3 %vm70_vm0, %v1262_v32 }
0x114d   :  { %v1291_v38 = vpop.f32.mrf.mxu3 }
0x114e   :  { %v1292_v39 = vadd.f32 %v1439_v37, %v1291_v38 }
0x1150   :  { %1503 = vtanh.f32 %v1292_v39 }
0x1156   :  { %v1504_v54 = vpop.eup %1503 }
0x1157   :  { %1412 = vmatmul.msk.f32.vlgmr.msrb.gmra.mxu3 %vm70_vm0, %v1504_v54 }
0x11da   :  { %v1323_v41 = vpop.f32.mrf.mxu3 }
0x11db   :  { %v1324_v42 = vadd.f32 %v1440_v40, %v1323_v41 }
0x11dd   :  { %1326 = vst [vmem:[#allocation2] sm:$0x3] %v1324_v42 }
0x11de   :  { %1337 = dma.vmem_to_hbm [thread:$0]  %s1333_s11, 32, %s1335_s13, [#allocation3]  }
0x11df   :  { %1529 = dma.done.wait [#allocation3], 32  }
0x11e0   :  { %1530 = vsyncadd [#allocation3], 4294967264 }
0x11e1   :  { %1342 = vsyncpa [#allocation3], 1 }

</bundles_post_ra>
